<compile_context>
chip_gen: v7x
topology: tpu7x:2x2x1
jax: 0.10.0
libtpu: 0.0.40
codegen_flags: <defaults>
</compile_context>

<pallas_src>
import math
from functools import partial

import jax
import jax.numpy as jnp
from jax import lax
from jax.experimental import pallas as pl
from jax.experimental.pallas import tpu as pltpu


def _layernorm(z, g, b, eps=1e-5):
    mu = jnp.mean(z, axis=-1, keepdims=True)
    var = jnp.mean(jnp.square(z - mu), axis=-1, keepdims=True)
    return (z - mu) * lax.rsqrt(var + eps) * g + b


def block_kernel(n_heads, tile_t,
                 x_ref, c_ref,
                 w_ada_ref, b_ada_ref,
                 g1_ref, bt1_ref,
                 wq_ref, wk_ref, wv_ref, bq_ref, bk_ref, bv_ref,
                 wproj_ref, bproj_ref,
                 g2_ref, bt2_ref,
                 wfc1_ref, bfc1_ref, wfc2_ref, bfc2_ref,
                 o_ref):
    f32, bf16 = jnp.float32, jnp.bfloat16
    T, C = x_ref.shape[1], x_ref.shape[2]
    H = n_heads
    hs = C // H

    t0 = pl.multiple_of(pl.program_id(1) * tile_t, tile_t)

    x_full = x_ref[0].astype(f32)                           # (T, C)
    cvec = c_ref[0].astype(f32)                             # (1, C)

    # ---- AdaLNModulation: SiLU -> Linear(C, 6C), chunk into 6 (1, C) rows ----
    c_act = cvec * jax.nn.sigmoid(cvec)
    mod = jnp.dot(c_act.astype(bf16), w_ada_ref[...],
                  preferred_element_type=f32) + b_ada_ref[...]          # (1, 6C)
    shift_msa = mod[:, 0 * C:1 * C]
    one_plus_scale_msa = 1.0 + mod[:, 1 * C:2 * C]          # hoisted broadcast operand
    gate_msa = mod[:, 2 * C:3 * C]
    shift_mlp = mod[:, 3 * C:4 * C]
    one_plus_scale_mlp = 1.0 + mod[:, 4 * C:5 * C]
    gate_mlp = mod[:, 5 * C:6 * C]

    # ---- attention branch: K/V need the full sequence; Q / residual / MLP
    # ---- only need this sequence tile.
    h_full = _layernorm(x_full, g1_ref[...], bt1_ref[...])
    h_full = h_full * one_plus_scale_msa + shift_msa        # (T, C)
    h_full_bf = h_full.astype(bf16)

    if tile_t == T:
        x_tile = x_full
        h_tile_bf = h_full_bf
    else:
        x_tile = x_ref[0, pl.ds(t0, tile_t), :].astype(f32)
        h_tile = _layernorm(x_tile, g1_ref[...], bt1_ref[...])
        h_tile = h_tile * one_plus_scale_msa + shift_msa
        h_tile_bf = h_tile.astype(bf16)

    inv_sqrt_d = 1.0 / math.sqrt(hs)
    attn = jnp.zeros((tile_t, C), f32)
    # Heads via leading-dim indexing of pre-split weights: no lane slicing, no
    # per-head transposes, no concatenate; per-head result is folded straight
    # into the output-projection accumulator (only (TT, C) stays live).
    for h in range(H):
        q_h = jnp.dot(h_tile_bf, wq_ref[h], preferred_element_type=f32) + bq_ref[h]
        k_h = jnp.dot(h_full_bf, wk_ref[h], preferred_element_type=f32) + bk_ref[h]
        v_h = jnp.dot(h_full_bf, wv_ref[h], preferred_element_type=f32) + bv_ref[h]
        # scores = q k^T without explicit transpose (contract dim 1 with dim 1)
        s = lax.dot_general((q_h * inv_sqrt_d).astype(bf16), k_h.astype(bf16),
                            (((1,), (1,)), ((), ())),
                            preferred_element_type=f32)                  # (TT, T)
        s = s - jnp.max(s, axis=-1, keepdims=True)
        p = jnp.exp(s)
        p = p * pl.reciprocal(jnp.sum(p, axis=-1, keepdims=True), approx=True)
        o_h = jnp.dot(p.astype(bf16), v_h.astype(bf16),
                      preferred_element_type=f32)                        # (TT, hs)
        attn = attn + jnp.dot(o_h.astype(bf16), wproj_ref[h],
                              preferred_element_type=f32)                # (TT, C)
    attn = attn + bproj_ref[...]
    # TODO(synk): attn_dropout / resid_dropout are identity (eval mode / dropout=0).

    x1 = x_tile + gate_msa * attn

    # ---- MLP branch: modulate(norm2(x1)) -> fc1 -> GELU(tanh) -> fc2 ----
    h2 = _layernorm(x1, g2_ref[...], bt2_ref[...])
    h2 = h2 * one_plus_scale_mlp + shift_mlp
    ff = jnp.dot(h2.astype(bf16), wfc1_ref[...],
                 preferred_element_type=f32) + bfc1_ref[...]
    ff = jax.nn.gelu(ff, approximate=True)                  # GELU(approximate='tanh')
    ff = jnp.dot(ff.astype(bf16), wfc2_ref[...],
                 preferred_element_type=f32) + bfc2_ref[...]

    o_ref[0] = (x1 + gate_mlp * ff).astype(o_ref.dtype)


def block_forward(x, c, params, n_heads, tile_t=None):
    B, T, C = x.shape
    H = n_heads
    assert C % H == 0
    hs = C // H
    if tile_t is None:
        tile_t = T if T <= 128 else 128
    assert T % tile_t == 0 and (tile_t == T or tile_t % 8 == 0)
    nt = T // tile_t

    bf16, f32 = jnp.bfloat16, jnp.float32
    c3 = c.reshape(B, 1, C).astype(f32)

    wqkv, bqkv = params["wqkv"], params["bqkv"]

    def split_heads_w(w):       # (C, C) -> (H, C, hs)  (done once, in the wrapper)
        return w.reshape(C, H, hs).transpose(1, 0, 2).astype(bf16)

    def split_heads_b(b):       # (1, C) -> (H, 1, hs)
        return b.reshape(1, H, hs).transpose(1, 0, 2).astype(f32)

    weights = [
        params["w_ada"].astype(bf16), params["b_ada"].astype(f32),
        params["g1"].astype(f32), params["bt1"].astype(f32),
        split_heads_w(wqkv[:, 0:C]),
        split_heads_w(wqkv[:, C:2 * C]),
        split_heads_w(wqkv[:, 2 * C:3 * C]),
        split_heads_b(bqkv[:, 0:C]),
        split_heads_b(bqkv[:, C:2 * C]),
        split_heads_b(bqkv[:, 2 * C:3 * C]),
        params["wproj"].reshape(H, hs, C).astype(bf16), params["bproj"].astype(f32),
        params["g2"].astype(f32), params["bt2"].astype(f32),
        params["wfc1"].astype(bf16), params["bfc1"].astype(f32),
        params["wfc2"].astype(bf16), params["bfc2"].astype(f32),
    ]

    def full_spec(a):
        zeros = (0,) * a.ndim
        return pl.BlockSpec(a.shape, lambda b, t, _z=zeros: _z)

    in_specs = [
        pl.BlockSpec((1, T, C), lambda b, t: (b, 0, 0)),   # x: full seq (K/V need all T)
        pl.BlockSpec((1, 1, C), lambda b, t: (b, 0, 0)),   # c
    ] + [full_spec(w) for w in weights]
    # TODO(synk): for very large C (v7x 64 MiB VMEM), stream wfc1/wfc2 and the
    # QKV head weights through an extra grid axis instead of keeping them fully
    # VMEM-resident (they are already bf16 here to halve the footprint).

    out_specs = pl.BlockSpec((1, tile_t, C), lambda b, t: (b, t, 0))

    return pl.pallas_call(
        partial(block_kernel, n_heads, tile_t),
        out_shape=jax.ShapeDtypeStruct((B, T, C), x.dtype),
        grid_spec=pltpu.PrefetchScalarGridSpec(
            num_scalar_prefetch=0,
            grid=(B, nt),
            in_specs=in_specs,
            out_specs=out_specs,
        ),
        compiler_params=pltpu.CompilerParams(
            dimension_semantics=("parallel", "parallel"),
            vmem_limit_bytes=64 * 1024 * 1024,
        ),
    )(x, c3, *weights)


def reference_forward(x, c, params, n_heads):
    """Pure-JAX (f32) reference mirroring the PyTorch Block.forward (eval mode)."""
    B, T, C = x.shape
    hs = C // n_heads

    c_act = c * jax.nn.sigmoid(c)
    mod = c_act @ params["w_ada"] + params["b_ada"][0]           # (B, 6C)
    sm, scm, gm, sl, scl, gl = jnp.split(mod, 6, axis=1)

    def ln(z, g, b):
        mu = jnp.mean(z, axis=-1, keepdims=True)
        var = jnp.mean((z - mu) ** 2, axis=-1, keepdims=True)
        return (z - mu) / jnp.sqrt(var + 1e-5) * g[0] + b[0]

    h = ln(x, params["g1"], params["bt1"])
    h = h * (1 + scm[:, None, :]) + sm[:, None, :]
    qkv = h @ params["wqkv"] + params["bqkv"][0]
    q, k, v = jnp.split(qkv, 3, axis=2)
    q = q.reshape(B, T, n_heads, hs).transpose(0, 2, 1, 3)
    k = k.reshape(B, T, n_heads, hs).transpose(0, 2, 1, 3)
    v = v.reshape(B, T, n_heads, hs).transpose(0, 2, 1, 3)
    w = jnp.einsum("bhqd,bhkd->bhqk", q, k) / math.sqrt(hs)
    w = jax.nn.softmax(w, axis=-1)
    o = jnp.einsum("bhqk,bhkd->bhqd", w, v).transpose(0, 2, 1, 3).reshape(B, T, C)
    o = o @ params["wproj"] + params["bproj"][0]
    x1 = x + gm[:, None, :] * o

    h2 = ln(x1, params["g2"], params["bt2"])
    h2 = h2 * (1 + scl[:, None, :]) + sl[:, None, :]
    ff = h2 @ params["wfc1"] + params["bfc1"][0]
    ff = jax.nn.gelu(ff, approximate=True)
    ff = ff @ params["wfc2"] + params["bfc2"][0]
    return x1 + gl[:, None, :] * ff


def init_params(key, C, mlp_ratio):
    ks = jax.random.split(key, 10)
    n = lambda k, shape, s=0.02: (s * jax.random.normal(k, shape)).astype(jnp.float32)
    return {
        "w_ada": n(ks[0], (C, 6 * C)),
        "b_ada": n(ks[1], (1, 6 * C), 0.01),
        "g1": jnp.ones((1, C), jnp.float32),
        "bt1": jnp.zeros((1, C), jnp.float32),
        "wqkv": n(ks[2], (C, 3 * C)),
        "bqkv": n(ks[3], (1, 3 * C), 0.01),
        "wproj": n(ks[4], (C, C)),
        "bproj": n(ks[5], (1, C), 0.01),
        "g2": jnp.ones((1, C), jnp.float32),
        "bt2": jnp.zeros((1, C), jnp.float32),
        "wfc1": n(ks[6], (C, mlp_ratio * C)),
        "bfc1": n(ks[7], (1, mlp_ratio * C), 0.01),
        "wfc2": n(ks[8], (mlp_ratio * C, C)),
        "bfc2": n(ks[9], (1, C), 0.01),
    }


if __name__ == "__main__":
    B, T, C = 2, 16, 32
    n_heads, mlp_ratio = 4, 4

    key = jax.random.PRNGKey(0)
    kx, kc, kp = jax.random.split(key, 3)
    x = jax.random.normal(kx, (B, T, C), dtype=jnp.float32)
    c = jax.random.normal(kc, (B, C), dtype=jnp.float32)
    params = init_params(kp, C, mlp_ratio)

    # tile_t=8 -> grid = (B, 2): exercises the sequence-tile axis (4 parallel steps).
    out = block_forward(x, c, params, n_heads, tile_t=8)
    out = jax.block_until_ready(out)

    ref = reference_forward(x, c, params, n_heads)
    assert out.shape == (B, T, C)
    # bf16 MXU inputs + approx reciprocal -> compare with a modest tolerance.
    assert jnp.allclose(out, ref, rtol=1e-2, atol=1e-2), "mismatch vs JAX reference"

    print("KERNEL_OK")
</pallas_src>

<mosaic_0001>
module attributes {stable_mosaic.version = 11 : i64} {
  func.func @block_kernel(%arg0: i32, %arg1: i32, %arg2: memref<1x16x32xf32, #tpu.memory_space<vmem>>, %arg3: memref<1x1x32xf32, #tpu.memory_space<vmem>>, %arg4: memref<32x192xbf16, #tpu.memory_space<vmem>>, %arg5: memref<1x192xf32, #tpu.memory_space<vmem>>, %arg6: memref<1x32xf32, #tpu.memory_space<vmem>>, %arg7: memref<1x32xf32, #tpu.memory_space<vmem>>, %arg8: memref<4x32x8xbf16, #tpu.memory_space<vmem>>, %arg9: memref<4x32x8xbf16, #tpu.memory_space<vmem>>, %arg10: memref<4x32x8xbf16, #tpu.memory_space<vmem>>, %arg11: memref<4x1x8xf32, #tpu.memory_space<vmem>>, %arg12: memref<4x1x8xf32, #tpu.memory_space<vmem>>, %arg13: memref<4x1x8xf32, #tpu.memory_space<vmem>>, %arg14: memref<4x8x32xbf16, #tpu.memory_space<vmem>>, %arg15: memref<1x32xf32, #tpu.memory_space<vmem>>, %arg16: memref<1x32xf32, #tpu.memory_space<vmem>>, %arg17: memref<1x32xf32, #tpu.memory_space<vmem>>, %arg18: memref<32x128xbf16, #tpu.memory_space<vmem>>, %arg19: memref<1x128xf32, #tpu.memory_space<vmem>>, %arg20: memref<128x32xbf16, #tpu.memory_space<vmem>>, %arg21: memref<1x32xf32, #tpu.memory_space<vmem>>, %arg22: memref<1x8x32xf32, #tpu.memory_space<vmem>>) attributes {dimension_semantics = [#tpu.dimension_semantics<parallel>, #tpu.dimension_semantics<parallel>], iteration_bounds = array<i64: 2, 2>, scalar_prefetch = 0 : i64, scratch_operands = 0 : i64, tpu.core_type = #tpu.core_type<tc>, window_params = [{transform_indices = @transform_0, window_bounds = array<i64: 1, 16, 32>}, {transform_indices = @transform_1, window_bounds = array<i64: 1, 1, 32>}, {pipeline_mode = #tpu.pipeline_mode<synchronous>, transform_indices = @transform_2, window_bounds = array<i64: 32, 192>}, {pipeline_mode = #tpu.pipeline_mode<synchronous>, transform_indices = @transform_3, window_bounds = array<i64: 1, 192>}, {pipeline_mode = #tpu.pipeline_mode<synchronous>, transform_indices = @transform_4, window_bounds = array<i64: 1, 32>}, {pipeline_mode = #tpu.pipeline_mode<synchronous>, transform_indices = @transform_5, window_bounds = array<i64: 1, 32>}, {pipeline_mode = #tpu.pipeline_mode<synchronous>, transform_indices = @transform_6, window_bounds = array<i64: 4, 32, 8>}, {pipeline_mode = #tpu.pipeline_mode<synchronous>, transform_indices = @transform_7, window_bounds = array<i64: 4, 32, 8>}, {pipeline_mode = #tpu.pipeline_mode<synchronous>, transform_indices = @transform_8, window_bounds = array<i64: 4, 32, 8>}, {pipeline_mode = #tpu.pipeline_mode<synchronous>, transform_indices = @transform_9, window_bounds = array<i64: 4, 1, 8>}, {pipeline_mode = #tpu.pipeline_mode<synchronous>, transform_indices = @transform_10, window_bounds = array<i64: 4, 1, 8>}, {pipeline_mode = #tpu.pipeline_mode<synchronous>, transform_indices = @transform_11, window_bounds = array<i64: 4, 1, 8>}, {pipeline_mode = #tpu.pipeline_mode<synchronous>, transform_indices = @transform_12, window_bounds = array<i64: 4, 8, 32>}, {pipeline_mode = #tpu.pipeline_mode<synchronous>, transform_indices = @transform_13, window_bounds = array<i64: 1, 32>}, {pipeline_mode = #tpu.pipeline_mode<synchronous>, transform_indices = @transform_14, window_bounds = array<i64: 1, 32>}, {pipeline_mode = #tpu.pipeline_mode<synchronous>, transform_indices = @transform_15, window_bounds = array<i64: 1, 32>}, {pipeline_mode = #tpu.pipeline_mode<synchronous>, transform_indices = @transform_16, window_bounds = array<i64: 32, 128>}, {pipeline_mode = #tpu.pipeline_mode<synchronous>, transform_indices = @transform_17, window_bounds = array<i64: 1, 128>}, {pipeline_mode = #tpu.pipeline_mode<synchronous>, transform_indices = @transform_18, window_bounds = array<i64: 128, 32>}, {pipeline_mode = #tpu.pipeline_mode<synchronous>, transform_indices = @transform_19, window_bounds = array<i64: 1, 32>}, {transform_indices = @transform_20, window_bounds = array<i64: 1, 8, 32>}]} {
    %c8_i32 = arith.constant 8 : i32
    %0 = arith.muli %arg1, %c8_i32 : i32
    %1 = tpu.assume_multiple %0, 8 : i32
    %c0 = arith.constant 0 : index
    %c0_0 = arith.constant 0 : index
    %c0_1 = arith.constant 0 : index
    %2 = vector.load %arg2[%c0, %c0_0, %c0_1] : memref<1x16x32xf32, #tpu.memory_space<vmem>>, vector<1x16x32xf32>
    %3 = vector.shape_cast %2 : vector<1x16x32xf32> to vector<16x32xf32>
    %c0_2 = arith.constant 0 : index
    %c0_3 = arith.constant 0 : index
    %c0_4 = arith.constant 0 : index
    %4 = vector.load %arg3[%c0_2, %c0_3, %c0_4] : memref<1x1x32xf32, #tpu.memory_space<vmem>>, vector<1x1x32xf32>
    %5 = vector.shape_cast %4 : vector<1x1x32xf32> to vector<1x32xf32>
    %6 = arith.negf %5 : vector<1x32xf32>
    %7 = math.exp %6 : vector<1x32xf32>
    %cst = arith.constant 1.000000e+00 : f32
    %8 = vector.broadcast %cst : f32 to vector<1x32xf32>
    %9 = arith.addf %8, %7 : vector<1x32xf32>
    %10 = arith.divf %8, %9 : vector<1x32xf32>
    %11 = arith.mulf %5, %10 : vector<1x32xf32>
    %12 = arith.truncf %11 : vector<1x32xf32> to vector<1x32xbf16>
    %c0_5 = arith.constant 0 : index
    %c0_6 = arith.constant 0 : index
    %13 = vector.load %arg4[%c0_5, %c0_6] : memref<32x192xbf16, #tpu.memory_space<vmem>>, vector<32x192xbf16>
    %cst_7 = arith.constant dense<0.000000e+00> : vector<1x192xf32>
    %14 = tpu.matmul %12, %13, %cst_7 {dimension_numbers = #tpu.dot_dimension_numbers<[1], [0], [0], [1], [0, 0, 1, 1], [], []>} : vector<1x32xbf16>, vector<32x192xbf16>, vector<1x192xf32> -> vector<1x192xf32>
    %c0_8 = arith.constant 0 : index
    %c0_9 = arith.constant 0 : index
    %15 = vector.load %arg5[%c0_8, %c0_9] : memref<1x192xf32, #tpu.memory_space<vmem>>, vector<1x192xf32>
    %16 = arith.addf %14, %15 : vector<1x192xf32>
    %17 = vector.extract_strided_slice %16 {offsets = [0, 0], sizes = [1, 32], strides = [1, 1]} : vector<1x192xf32> to vector<1x32xf32>
    %18 = vector.extract_strided_slice %16 {offsets = [0, 32], sizes = [1, 32], strides = [1, 1]} : vector<1x192xf32> to vector<1x32xf32>
    %cst_10 = arith.constant 1.000000e+00 : f32
    %19 = vector.broadcast %cst_10 : f32 to vector<1x32xf32>
    %20 = arith.addf %19, %18 : vector<1x32xf32>
    %21 = vector.extract_strided_slice %16 {offsets = [0, 64], sizes = [1, 32], strides = [1, 1]} : vector<1x192xf32> to vector<1x32xf32>
    %22 = vector.extract_strided_slice %16 {offsets = [0, 96], sizes = [1, 32], strides = [1, 1]} : vector<1x192xf32> to vector<1x32xf32>
    %23 = vector.extract_strided_slice %16 {offsets = [0, 128], sizes = [1, 32], strides = [1, 1]} : vector<1x192xf32> to vector<1x32xf32>
    %cst_11 = arith.constant 1.000000e+00 : f32
    %24 = vector.broadcast %cst_11 : f32 to vector<1x32xf32>
    %25 = arith.addf %24, %23 : vector<1x32xf32>
    %26 = vector.extract_strided_slice %16 {offsets = [0, 160], sizes = [1, 32], strides = [1, 1]} : vector<1x192xf32> to vector<1x32xf32>
    %c0_12 = arith.constant 0 : index
    %c0_13 = arith.constant 0 : index
    %27 = vector.load %arg6[%c0_12, %c0_13] : memref<1x32xf32, #tpu.memory_space<vmem>>, vector<1x32xf32>
    %c0_14 = arith.constant 0 : index
    %c0_15 = arith.constant 0 : index
    %28 = vector.load %arg7[%c0_14, %c0_15] : memref<1x32xf32, #tpu.memory_space<vmem>>, vector<1x32xf32>
    %cst_16 = arith.constant dense<0.000000e+00> : vector<16xf32>
    %29 = vector.multi_reduction <add>, %3, %cst_16 [1] : vector<16x32xf32> to vector<16xf32>
    %30 = vector.shape_cast %29 : vector<16xf32> to vector<16x1xf32>
    %cst_17 = arith.constant 3.200000e+01 : f32
    %31 = vector.broadcast %cst_17 : f32 to vector<16x1xf32>
    %32 = arith.divf %30, %31 : vector<16x1xf32>
    %33 = vector.broadcast %32 : vector<16x1xf32> to vector<16x32xf32>
    %34 = arith.subf %3, %33 : vector<16x32xf32>
    %35 = arith.mulf %34, %34 : vector<16x32xf32>
    %cst_18 = arith.constant dense<0.000000e+00> : vector<16xf32>
    %36 = vector.multi_reduction <add>, %35, %cst_18 [1] : vector<16x32xf32> to vector<16xf32>
    %37 = vector.shape_cast %36 : vector<16xf32> to vector<16x1xf32>
    %cst_19 = arith.constant 3.200000e+01 : f32
    %38 = vector.broadcast %cst_19 : f32 to vector<16x1xf32>
    %39 = arith.divf %37, %38 : vector<16x1xf32>
    %40 = vector.broadcast %32 : vector<16x1xf32> to vector<16x32xf32>
    %41 = arith.subf %3, %40 : vector<16x32xf32>
    %cst_20 = arith.constant 9.99999974E-6 : f32
    %42 = vector.broadcast %cst_20 : f32 to vector<16x1xf32>
    %43 = arith.addf %39, %42 : vector<16x1xf32>
    %44 = math.rsqrt %43 : vector<16x1xf32>
    %45 = vector.broadcast %44 : vector<16x1xf32> to vector<16x32xf32>
    %46 = arith.mulf %41, %45 : vector<16x32xf32>
    %47 = vector.broadcast %27 : vector<1x32xf32> to vector<16x32xf32>
    %48 = arith.mulf %46, %47 : vector<16x32xf32>
    %49 = vector.broadcast %28 : vector<1x32xf32> to vector<16x32xf32>
    %50 = arith.addf %48, %49 : vector<16x32xf32>
    %51 = vector.broadcast %20 : vector<1x32xf32> to vector<16x32xf32>
    %52 = arith.mulf %50, %51 : vector<16x32xf32>
    %53 = vector.broadcast %17 : vector<1x32xf32> to vector<16x32xf32>
    %54 = arith.addf %52, %53 : vector<16x32xf32>
    %55 = arith.truncf %54 : vector<16x32xf32> to vector<16x32xbf16>
    %c0_21 = arith.constant 0 : index
    %56 = arith.index_cast %1 : i32 to index
    %c0_22 = arith.constant 0 : index
    %57 = vector.load %arg2[%c0_21, %56, %c0_22] : memref<1x16x32xf32, #tpu.memory_space<vmem>>, vector<1x8x32xf32>
    %58 = vector.shape_cast %57 : vector<1x8x32xf32> to vector<8x32xf32>
    %c0_23 = arith.constant 0 : index
    %c0_24 = arith.constant 0 : index
    %59 = vector.load %arg6[%c0_23, %c0_24] : memref<1x32xf32, #tpu.memory_space<vmem>>, vector<1x32xf32>
    %c0_25 = arith.constant 0 : index
    %c0_26 = arith.constant 0 : index
    %60 = vector.load %arg7[%c0_25, %c0_26] : memref<1x32xf32, #tpu.memory_space<vmem>>, vector<1x32xf32>
    %cst_27 = arith.constant dense<0.000000e+00> : vector<8xf32>
    %61 = vector.multi_reduction <add>, %58, %cst_27 [1] : vector<8x32xf32> to vector<8xf32>
    %62 = vector.shape_cast %61 : vector<8xf32> to vector<8x1xf32>
    %cst_28 = arith.constant 3.200000e+01 : f32
    %63 = vector.broadcast %cst_28 : f32 to vector<8x1xf32>
    %64 = arith.divf %62, %63 : vector<8x1xf32>
    %65 = vector.broadcast %64 : vector<8x1xf32> to vector<8x32xf32>
    %66 = arith.subf %58, %65 : vector<8x32xf32>
    %67 = arith.mulf %66, %66 : vector<8x32xf32>
    %cst_29 = arith.constant dense<0.000000e+00> : vector<8xf32>
    %68 = vector.multi_reduction <add>, %67, %cst_29 [1] : vector<8x32xf32> to vector<8xf32>
    %69 = vector.shape_cast %68 : vector<8xf32> to vector<8x1xf32>
    %cst_30 = arith.constant 3.200000e+01 : f32
    %70 = vector.broadcast %cst_30 : f32 to vector<8x1xf32>
    %71 = arith.divf %69, %70 : vector<8x1xf32>
    %72 = vector.broadcast %64 : vector<8x1xf32> to vector<8x32xf32>
    %73 = arith.subf %58, %72 : vector<8x32xf32>
    %cst_31 = arith.constant 9.99999974E-6 : f32
    %74 = vector.broadcast %cst_31 : f32 to vector<8x1xf32>
    %75 = arith.addf %71, %74 : vector<8x1xf32>
    %76 = math.rsqrt %75 : vector<8x1xf32>
    %77 = vector.broadcast %76 : vector<8x1xf32> to vector<8x32xf32>
    %78 = arith.mulf %73, %77 : vector<8x32xf32>
    %79 = vector.broadcast %59 : vector<1x32xf32> to vector<8x32xf32>
    %80 = arith.mulf %78, %79 : vector<8x32xf32>
    %81 = vector.broadcast %60 : vector<1x32xf32> to vector<8x32xf32>
    %82 = arith.addf %80, %81 : vector<8x32xf32>
    %83 = vector.broadcast %20 : vector<1x32xf32> to vector<8x32xf32>
    %84 = arith.mulf %82, %83 : vector<8x32xf32>
    %85 = vector.broadcast %17 : vector<1x32xf32> to vector<8x32xf32>
    %86 = arith.addf %84, %85 : vector<8x32xf32>
    %87 = arith.truncf %86 : vector<8x32xf32> to vector<8x32xbf16>
    %cst_32 = arith.constant 0.000000e+00 : f32
    %88 = vector.broadcast %cst_32 : f32 to vector<8x32xf32>
    %c0_33 = arith.constant 0 : index
    %c0_34 = arith.constant 0 : index
    %c0_35 = arith.constant 0 : index
    %89 = vector.load %arg8[%c0_33, %c0_34, %c0_35] : memref<4x32x8xbf16, #tpu.memory_space<vmem>>, vector<1x32x8xbf16>
    %90 = vector.shape_cast %89 : vector<1x32x8xbf16> to vector<32x8xbf16>
    %cst_36 = arith.constant dense<0.000000e+00> : vector<8x8xf32>
    %91 = tpu.matmul %87, %90, %cst_36 {dimension_numbers = #tpu.dot_dimension_numbers<[1], [0], [0], [1], [0, 0, 1, 1], [], []>} : vector<8x32xbf16>, vector<32x8xbf16>, vector<8x8xf32> -> vector<8x8xf32>
    %c0_37 = arith.constant 0 : index
    %c0_38 = arith.constant 0 : index
    %c0_39 = arith.constant 0 : index
    %92 = vector.load %arg11[%c0_37, %c0_38, %c0_39] : memref<4x1x8xf32, #tpu.memory_space<vmem>>, vector<1x1x8xf32>
    %93 = vector.shape_cast %92 : vector<1x1x8xf32> to vector<1x8xf32>
    %94 = vector.broadcast %93 : vector<1x8xf32> to vector<8x8xf32>
    %95 = arith.addf %91, %94 : vector<8x8xf32>
    %c0_40 = arith.constant 0 : index
    %c0_41 = arith.constant 0 : index
    %c0_42 = arith.constant 0 : index
    %96 = vector.load %arg9[%c0_40, %c0_41, %c0_42] : memref<4x32x8xbf16, #tpu.memory_space<vmem>>, vector<1x32x8xbf16>
    %97 = vector.shape_cast %96 : vector<1x32x8xbf16> to vector<32x8xbf16>
    %cst_43 = arith.constant dense<0.000000e+00> : vector<16x8xf32>
    %98 = tpu.matmul %55, %97, %cst_43 {dimension_numbers = #tpu.dot_dimension_numbers<[1], [0], [0], [1], [0, 0, 1, 1], [], []>} : vector<16x32xbf16>, vector<32x8xbf16>, vector<16x8xf32> -> vector<16x8xf32>
    %c0_44 = arith.constant 0 : index
    %c0_45 = arith.constant 0 : index
    %c0_46 = arith.constant 0 : index
    %99 = vector.load %arg12[%c0_44, %c0_45, %c0_46] : memref<4x1x8xf32, #tpu.memory_space<vmem>>, vector<1x1x8xf32>
    %100 = vector.shape_cast %99 : vector<1x1x8xf32> to vector<1x8xf32>
    %101 = vector.broadcast %100 : vector<1x8xf32> to vector<16x8xf32>
    %102 = arith.addf %98, %101 : vector<16x8xf32>
    %c0_47 = arith.constant 0 : index
    %c0_48 = arith.constant 0 : index
    %c0_49 = arith.constant 0 : index
    %103 = vector.load %arg10[%c0_47, %c0_48, %c0_49] : memref<4x32x8xbf16, #tpu.memory_space<vmem>>, vector<1x32x8xbf16>
    %104 = vector.shape_cast %103 : vector<1x32x8xbf16> to vector<32x8xbf16>
    %cst_50 = arith.constant dense<0.000000e+00> : vector<16x8xf32>
    %105 = tpu.matmul %55, %104, %cst_50 {dimension_numbers = #tpu.dot_dimension_numbers<[1], [0], [0], [1], [0, 0, 1, 1], [], []>} : vector<16x32xbf16>, vector<32x8xbf16>, vector<16x8xf32> -> vector<16x8xf32>
    %c0_51 = arith.constant 0 : index
    %c0_52 = arith.constant 0 : index
    %c0_53 = arith.constant 0 : index
    %106 = vector.load %arg13[%c0_51, %c0_52, %c0_53] : memref<4x1x8xf32, #tpu.memory_space<vmem>>, vector<1x1x8xf32>
    %107 = vector.shape_cast %106 : vector<1x1x8xf32> to vector<1x8xf32>
    %108 = vector.broadcast %107 : vector<1x8xf32> to vector<16x8xf32>
    %109 = arith.addf %105, %108 : vector<16x8xf32>
    %cst_54 = arith.constant 0.353553385 : f32
    %110 = vector.broadcast %cst_54 : f32 to vector<8x8xf32>
    %111 = arith.mulf %95, %110 : vector<8x8xf32>
    %112 = arith.truncf %111 : vector<8x8xf32> to vector<8x8xbf16>
    %113 = arith.truncf %102 : vector<16x8xf32> to vector<16x8xbf16>
    %cst_55 = arith.constant dense<0.000000e+00> : vector<8x16xf32>
    %114 = tpu.matmul %112, %113, %cst_55 {dimension_numbers = #tpu.dot_dimension_numbers<[1], [1], [0], [0], [0, 0, 1, 0], [], []>} : vector<8x8xbf16>, vector<16x8xbf16>, vector<8x16xf32> -> vector<8x16xf32>
    %cst_56 = arith.constant dense<0xFF800000> : vector<8xf32>
    %115 = vector.multi_reduction <maximumf>, %114, %cst_56 [1] : vector<8x16xf32> to vector<8xf32>
    %116 = vector.shape_cast %115 : vector<8xf32> to vector<8x1xf32>
    %117 = vector.broadcast %116 : vector<8x1xf32> to vector<8x16xf32>
    %118 = arith.subf %114, %117 : vector<8x16xf32>
    %119 = math.exp %118 : vector<8x16xf32>
    %cst_57 = arith.constant dense<0.000000e+00> : vector<8xf32>
    %120 = vector.multi_reduction <add>, %119, %cst_57 [1] : vector<8x16xf32> to vector<8xf32>
    %121 = vector.shape_cast %120 : vector<8xf32> to vector<8x1xf32>
    %122 = tpu.reciprocal %121 {approx = true} : vector<8x1xf32> -> vector<8x1xf32>
    %123 = vector.broadcast %122 : vector<8x1xf32> to vector<8x16xf32>
    %124 = arith.mulf %119, %123 : vector<8x16xf32>
    %125 = arith.truncf %124 : vector<8x16xf32> to vector<8x16xbf16>
    %126 = arith.truncf %109 : vector<16x8xf32> to vector<16x8xbf16>
    %cst_58 = arith.constant dense<0.000000e+00> : vector<8x8xf32>
    %127 = tpu.matmul %125, %126, %cst_58 {dimension_numbers = #tpu.dot_dimension_numbers<[1], [0], [0], [1], [0, 0, 1, 1], [], []>} : vector<8x16xbf16>, vector<16x8xbf16>, vector<8x8xf32> -> vector<8x8xf32>
    %128 = arith.truncf %127 : vector<8x8xf32> to vector<8x8xbf16>
    %c0_59 = arith.constant 0 : index
    %c0_60 = arith.constant 0 : index
    %c0_61 = arith.constant 0 : index
    %129 = vector.load %arg14[%c0_59, %c0_60, %c0_61] : memref<4x8x32xbf16, #tpu.memory_space<vmem>>, vector<1x8x32xbf16>
    %130 = vector.shape_cast %129 : vector<1x8x32xbf16> to vector<8x32xbf16>
    %cst_62 = arith.constant dense<0.000000e+00> : vector<8x32xf32>
    %131 = tpu.matmul %128, %130, %cst_62 {dimension_numbers = #tpu.dot_dimension_numbers<[1], [0], [0], [1], [0, 0, 1, 1], [], []>} : vector<8x8xbf16>, vector<8x32xbf16>, vector<8x32xf32> -> vector<8x32xf32>
    %132 = arith.addf %88, %131 : vector<8x32xf32>
    %c1 = arith.constant 1 : index
    %c0_63 = arith.constant 0 : index
    %c0_64 = arith.constant 0 : index
    %133 = vector.load %arg8[%c1, %c0_63, %c0_64] : memref<4x32x8xbf16, #tpu.memory_space<vmem>>, vector<1x32x8xbf16>
    %134 = vector.shape_cast %133 : vector<1x32x8xbf16> to vector<32x8xbf16>
    %cst_65 = arith.constant dense<0.000000e+00> : vector<8x8xf32>
    %135 = tpu.matmul %87, %134, %cst_65 {dimension_numbers = #tpu.dot_dimension_numbers<[1], [0], [0], [1], [0, 0, 1, 1], [], []>} : vector<8x32xbf16>, vector<32x8xbf16>, vector<8x8xf32> -> vector<8x8xf32>
    %c1_66 = arith.constant 1 : index
    %c0_67 = arith.constant 0 : index
    %c0_68 = arith.constant 0 : index
    %136 = vector.load %arg11[%c1_66, %c0_67, %c0_68] : memref<4x1x8xf32, #tpu.memory_space<vmem>>, vector<1x1x8xf32>
    %137 = vector.shape_cast %136 : vector<1x1x8xf32> to vector<1x8xf32>
    %138 = vector.broadcast %137 : vector<1x8xf32> to vector<8x8xf32>
    %139 = arith.addf %135, %138 : vector<8x8xf32>
    %c1_69 = arith.constant 1 : index
    %c0_70 = arith.constant 0 : index
    %c0_71 = arith.constant 0 : index
    %140 = vector.load %arg9[%c1_69, %c0_70, %c0_71] : memref<4x32x8xbf16, #tpu.memory_space<vmem>>, vector<1x32x8xbf16>
    %141 = vector.shape_cast %140 : vector<1x32x8xbf16> to vector<32x8xbf16>
    %cst_72 = arith.constant dense<0.000000e+00> : vector<16x8xf32>
    %142 = tpu.matmul %55, %141, %cst_72 {dimension_numbers = #tpu.dot_dimension_numbers<[1], [0], [0], [1], [0, 0, 1, 1], [], []>} : vector<16x32xbf16>, vector<32x8xbf16>, vector<16x8xf32> -> vector<16x8xf32>
    %c1_73 = arith.constant 1 : index
    %c0_74 = arith.constant 0 : index
    %c0_75 = arith.constant 0 : index
    %143 = vector.load %arg12[%c1_73, %c0_74, %c0_75] : memref<4x1x8xf32, #tpu.memory_space<vmem>>, vector<1x1x8xf32>
    %144 = vector.shape_cast %143 : vector<1x1x8xf32> to vector<1x8xf32>
    %145 = vector.broadcast %144 : vector<1x8xf32> to vector<16x8xf32>
    %146 = arith.addf %142, %145 : vector<16x8xf32>
    %c1_76 = arith.constant 1 : index
    %c0_77 = arith.constant 0 : index
    %c0_78 = arith.constant 0 : index
    %147 = vector.load %arg10[%c1_76, %c0_77, %c0_78] : memref<4x32x8xbf16, #tpu.memory_space<vmem>>, vector<1x32x8xbf16>
    %148 = vector.shape_cast %147 : vector<1x32x8xbf16> to vector<32x8xbf16>
    %cst_79 = arith.constant dense<0.000000e+00> : vector<16x8xf32>
    %149 = tpu.matmul %55, %148, %cst_79 {dimension_numbers = #tpu.dot_dimension_numbers<[1], [0], [0], [1], [0, 0, 1, 1], [], []>} : vector<16x32xbf16>, vector<32x8xbf16>, vector<16x8xf32> -> vector<16x8xf32>
    %c1_80 = arith.constant 1 : index
    %c0_81 = arith.constant 0 : index
    %c0_82 = arith.constant 0 : index
    %150 = vector.load %arg13[%c1_80, %c0_81, %c0_82] : memref<4x1x8xf32, #tpu.memory_space<vmem>>, vector<1x1x8xf32>
    %151 = vector.shape_cast %150 : vector<1x1x8xf32> to vector<1x8xf32>
    %152 = vector.broadcast %151 : vector<1x8xf32> to vector<16x8xf32>
    %153 = arith.addf %149, %152 : vector<16x8xf32>
    %cst_83 = arith.constant 0.353553385 : f32
    %154 = vector.broadcast %cst_83 : f32 to vector<8x8xf32>
    %155 = arith.mulf %139, %154 : vector<8x8xf32>
    %156 = arith.truncf %155 : vector<8x8xf32> to vector<8x8xbf16>
    %157 = arith.truncf %146 : vector<16x8xf32> to vector<16x8xbf16>
    %cst_84 = arith.constant dense<0.000000e+00> : vector<8x16xf32>
    %158 = tpu.matmul %156, %157, %cst_84 {dimension_numbers = #tpu.dot_dimension_numbers<[1], [1], [0], [0], [0, 0, 1, 0], [], []>} : vector<8x8xbf16>, vector<16x8xbf16>, vector<8x16xf32> -> vector<8x16xf32>
    %cst_85 = arith.constant dense<0xFF800000> : vector<8xf32>
    %159 = vector.multi_reduction <maximumf>, %158, %cst_85 [1] : vector<8x16xf32> to vector<8xf32>
    %160 = vector.shape_cast %159 : vector<8xf32> to vector<8x1xf32>
    %161 = vector.broadcast %160 : vector<8x1xf32> to vector<8x16xf32>
    %162 = arith.subf %158, %161 : vector<8x16xf32>
    %163 = math.exp %162 : vector<8x16xf32>
    %cst_86 = arith.constant dense<0.000000e+00> : vector<8xf32>
    %164 = vector.multi_reduction <add>, %163, %cst_86 [1] : vector<8x16xf32> to vector<8xf32>
    %165 = vector.shape_cast %164 : vector<8xf32> to vector<8x1xf32>
    %166 = tpu.reciprocal %165 {approx = true} : vector<8x1xf32> -> vector<8x1xf32>
    %167 = vector.broadcast %166 : vector<8x1xf32> to vector<8x16xf32>
    %168 = arith.mulf %163, %167 : vector<8x16xf32>
    %169 = arith.truncf %168 : vector<8x16xf32> to vector<8x16xbf16>
    %170 = arith.truncf %153 : vector<16x8xf32> to vector<16x8xbf16>
    %cst_87 = arith.constant dense<0.000000e+00> : vector<8x8xf32>
    %171 = tpu.matmul %169, %170, %cst_87 {dimension_numbers = #tpu.dot_dimension_numbers<[1], [0], [0], [1], [0, 0, 1, 1], [], []>} : vector<8x16xbf16>, vector<16x8xbf16>, vector<8x8xf32> -> vector<8x8xf32>
    %172 = arith.truncf %171 : vector<8x8xf32> to vector<8x8xbf16>
    %c1_88 = arith.constant 1 : index
    %c0_89 = arith.constant 0 : index
    %c0_90 = arith.constant 0 : index
    %173 = vector.load %arg14[%c1_88, %c0_89, %c0_90] : memref<4x8x32xbf16, #tpu.memory_space<vmem>>, vector<1x8x32xbf16>
    %174 = vector.shape_cast %173 : vector<1x8x32xbf16> to vector<8x32xbf16>
    %cst_91 = arith.constant dense<0.000000e+00> : vector<8x32xf32>
    %175 = tpu.matmul %172, %174, %cst_91 {dimension_numbers = #tpu.dot_dimension_numbers<[1], [0], [0], [1], [0, 0, 1, 1], [], []>} : vector<8x8xbf16>, vector<8x32xbf16>, vector<8x32xf32> -> vector<8x32xf32>
    %176 = arith.addf %132, %175 : vector<8x32xf32>
    %c2 = arith.constant 2 : index
    %c0_92 = arith.constant 0 : index
    %c0_93 = arith.constant 0 : index
    %177 = vector.load %arg8[%c2, %c0_92, %c0_93] : memref<4x32x8xbf16, #tpu.memory_space<vmem>>, vector<1x32x8xbf16>
    %178 = vector.shape_cast %177 : vector<1x32x8xbf16> to vector<32x8xbf16>
    %cst_94 = arith.constant dense<0.000000e+00> : vector<8x8xf32>
    %179 = tpu.matmul %87, %178, %cst_94 {dimension_numbers = #tpu.dot_dimension_numbers<[1], [0], [0], [1], [0, 0, 1, 1], [], []>} : vector<8x32xbf16>, vector<32x8xbf16>, vector<8x8xf32> -> vector<8x8xf32>
    %c2_95 = arith.constant 2 : index
    %c0_96 = arith.constant 0 : index
    %c0_97 = arith.constant 0 : index
    %180 = vector.load %arg11[%c2_95, %c0_96, %c0_97] : memref<4x1x8xf32, #tpu.memory_space<vmem>>, vector<1x1x8xf32>
    %181 = vector.shape_cast %180 : vector<1x1x8xf32> to vector<1x8xf32>
    %182 = vector.broadcast %181 : vector<1x8xf32> to vector<8x8xf32>
    %183 = arith.addf %179, %182 : vector<8x8xf32>
    %c2_98 = arith.constant 2 : index
    %c0_99 = arith.constant 0 : index
    %c0_100 = arith.constant 0 : index
    %184 = vector.load %arg9[%c2_98, %c0_99, %c0_100] : memref<4x32x8xbf16, #tpu.memory_space<vmem>>, vector<1x32x8xbf16>
    %185 = vector.shape_cast %184 : vector<1x32x8xbf16> to vector<32x8xbf16>
    %cst_101 = arith.constant dense<0.000000e+00> : vector<16x8xf32>
    %186 = tpu.matmul %55, %185, %cst_101 {dimension_numbers = #tpu.dot_dimension_numbers<[1], [0], [0], [1], [0, 0, 1, 1], [], []>} : vector<16x32xbf16>, vector<32x8xbf16>, vector<16x8xf32> -> vector<16x8xf32>
    %c2_102 = arith.constant 2 : index
    %c0_103 = arith.constant 0 : index
    %c0_104 = arith.constant 0 : index
    %187 = vector.load %arg12[%c2_102, %c0_103, %c0_104] : memref<4x1x8xf32, #tpu.memory_space<vmem>>, vector<1x1x8xf32>
    %188 = vector.shape_cast %187 : vector<1x1x8xf32> to vector<1x8xf32>
    %189 = vector.broadcast %188 : vector<1x8xf32> to vector<16x8xf32>
    %190 = arith.addf %186, %189 : vector<16x8xf32>
    %c2_105 = arith.constant 2 : index
    %c0_106 = arith.constant 0 : index
    %c0_107 = arith.constant 0 : index
    %191 = vector.load %arg10[%c2_105, %c0_106, %c0_107] : memref<4x32x8xbf16, #tpu.memory_space<vmem>>, vector<1x32x8xbf16>
    %192 = vector.shape_cast %191 : vector<1x32x8xbf16> to vector<32x8xbf16>
    %cst_108 = arith.constant dense<0.000000e+00> : vector<16x8xf32>
    %193 = tpu.matmul %55, %192, %cst_108 {dimension_numbers = #tpu.dot_dimension_numbers<[1], [0], [0], [1], [0, 0, 1, 1], [], []>} : vector<16x32xbf16>, vector<32x8xbf16>, vector<16x8xf32> -> vector<16x8xf32>
    %c2_109 = arith.constant 2 : index
    %c0_110 = arith.constant 0 : index
    %c0_111 = arith.constant 0 : index
    %194 = vector.load %arg13[%c2_109, %c0_110, %c0_111] : memref<4x1x8xf32, #tpu.memory_space<vmem>>, vector<1x1x8xf32>
    %195 = vector.shape_cast %194 : vector<1x1x8xf32> to vector<1x8xf32>
    %196 = vector.broadcast %195 : vector<1x8xf32> to vector<16x8xf32>
    %197 = arith.addf %193, %196 : vector<16x8xf32>
    %cst_112 = arith.constant 0.353553385 : f32
    %198 = vector.broadcast %cst_112 : f32 to vector<8x8xf32>
    %199 = arith.mulf %183, %198 : vector<8x8xf32>
    %200 = arith.truncf %199 : vector<8x8xf32> to vector<8x8xbf16>
    %201 = arith.truncf %190 : vector<16x8xf32> to vector<16x8xbf16>
    %cst_113 = arith.constant dense<0.000000e+00> : vector<8x16xf32>
    %202 = tpu.matmul %200, %201, %cst_113 {dimension_numbers = #tpu.dot_dimension_numbers<[1], [1], [0], [0], [0, 0, 1, 0], [], []>} : vector<8x8xbf16>, vector<16x8xbf16>, vector<8x16xf32> -> vector<8x16xf32>
    %cst_114 = arith.constant dense<0xFF800000> : vector<8xf32>
    %203 = vector.multi_reduction <maximumf>, %202, %cst_114 [1] : vector<8x16xf32> to vector<8xf32>
    %204 = vector.shape_cast %203 : vector<8xf32> to vector<8x1xf32>
    %205 = vector.broadcast %204 : vector<8x1xf32> to vector<8x16xf32>
    %206 = arith.subf %202, %205 : vector<8x16xf32>
    %207 = math.exp %206 : vector<8x16xf32>
    %cst_115 = arith.constant dense<0.000000e+00> : vector<8xf32>
    %208 = vector.multi_reduction <add>, %207, %cst_115 [1] : vector<8x16xf32> to vector<8xf32>
    %209 = vector.shape_cast %208 : vector<8xf32> to vector<8x1xf32>
    %210 = tpu.reciprocal %209 {approx = true} : vector<8x1xf32> -> vector<8x1xf32>
    %211 = vector.broadcast %210 : vector<8x1xf32> to vector<8x16xf32>
    %212 = arith.mulf %207, %211 : vector<8x16xf32>
    %213 = arith.truncf %212 : vector<8x16xf32> to vector<8x16xbf16>
    %214 = arith.truncf %197 : vector<16x8xf32> to vector<16x8xbf16>
    %cst_116 = arith.constant dense<0.000000e+00> : vector<8x8xf32>
    %215 = tpu.matmul %213, %214, %cst_116 {dimension_numbers = #tpu.dot_dimension_numbers<[1], [0], [0], [1], [0, 0, 1, 1], [], []>} : vector<8x16xbf16>, vector<16x8xbf16>, vector<8x8xf32> -> vector<8x8xf32>
    %216 = arith.truncf %215 : vector<8x8xf32> to vector<8x8xbf16>
    %c2_117 = arith.constant 2 : index
    %c0_118 = arith.constant 0 : index
    %c0_119 = arith.constant 0 : index
    %217 = vector.load %arg14[%c2_117, %c0_118, %c0_119] : memref<4x8x32xbf16, #tpu.memory_space<vmem>>, vector<1x8x32xbf16>
    %218 = vector.shape_cast %217 : vector<1x8x32xbf16> to vector<8x32xbf16>
    %cst_120 = arith.constant dense<0.000000e+00> : vector<8x32xf32>
    %219 = tpu.matmul %216, %218, %cst_120 {dimension_numbers = #tpu.dot_dimension_numbers<[1], [0], [0], [1], [0, 0, 1, 1], [], []>} : vector<8x8xbf16>, vector<8x32xbf16>, vector<8x32xf32> -> vector<8x32xf32>
    %220 = arith.addf %176, %219 : vector<8x32xf32>
    %c3 = arith.constant 3 : index
    %c0_121 = arith.constant 0 : index
    %c0_122 = arith.constant 0 : index
    %221 = vector.load %arg8[%c3, %c0_121, %c0_122] : memref<4x32x8xbf16, #tpu.memory_space<vmem>>, vector<1x32x8xbf16>
    %222 = vector.shape_cast %221 : vector<1x32x8xbf16> to vector<32x8xbf16>
    %cst_123 = arith.constant dense<0.000000e+00> : vector<8x8xf32>
    %223 = tpu.matmul %87, %222, %cst_123 {dimension_numbers = #tpu.dot_dimension_numbers<[1], [0], [0], [1], [0, 0, 1, 1], [], []>} : vector<8x32xbf16>, vector<32x8xbf16>, vector<8x8xf32> -> vector<8x8xf32>
    %c3_124 = arith.constant 3 : index
    %c0_125 = arith.constant 0 : index
    %c0_126 = arith.constant 0 : index
    %224 = vector.load %arg11[%c3_124, %c0_125, %c0_126] : memref<4x1x8xf32, #tpu.memory_space<vmem>>, vector<1x1x8xf32>
    %225 = vector.shape_cast %224 : vector<1x1x8xf32> to vector<1x8xf32>
    %226 = vector.broadcast %225 : vector<1x8xf32> to vector<8x8xf32>
    %227 = arith.addf %223, %226 : vector<8x8xf32>
    %c3_127 = arith.constant 3 : index
    %c0_128 = arith.constant 0 : index
    %c0_129 = arith.constant 0 : index
    %228 = vector.load %arg9[%c3_127, %c0_128, %c0_129] : memref<4x32x8xbf16, #tpu.memory_space<vmem>>, vector<1x32x8xbf16>
    %229 = vector.shape_cast %228 : vector<1x32x8xbf16> to vector<32x8xbf16>
    %cst_130 = arith.constant dense<0.000000e+00> : vector<16x8xf32>
    %230 = tpu.matmul %55, %229, %cst_130 {dimension_numbers = #tpu.dot_dimension_numbers<[1], [0], [0], [1], [0, 0, 1, 1], [], []>} : vector<16x32xbf16>, vector<32x8xbf16>, vector<16x8xf32> -> vector<16x8xf32>
    %c3_131 = arith.constant 3 : index
    %c0_132 = arith.constant 0 : index
    %c0_133 = arith.constant 0 : index
    %231 = vector.load %arg12[%c3_131, %c0_132, %c0_133] : memref<4x1x8xf32, #tpu.memory_space<vmem>>, vector<1x1x8xf32>
    %232 = vector.shape_cast %231 : vector<1x1x8xf32> to vector<1x8xf32>
    %233 = vector.broadcast %232 : vector<1x8xf32> to vector<16x8xf32>
    %234 = arith.addf %230, %233 : vector<16x8xf32>
    %c3_134 = arith.constant 3 : index
    %c0_135 = arith.constant 0 : index
    %c0_136 = arith.constant 0 : index
    %235 = vector.load %arg10[%c3_134, %c0_135, %c0_136] : memref<4x32x8xbf16, #tpu.memory_space<vmem>>, vector<1x32x8xbf16>
    %236 = vector.shape_cast %235 : vector<1x32x8xbf16> to vector<32x8xbf16>
    %cst_137 = arith.constant dense<0.000000e+00> : vector<16x8xf32>
    %237 = tpu.matmul %55, %236, %cst_137 {dimension_numbers = #tpu.dot_dimension_numbers<[1], [0], [0], [1], [0, 0, 1, 1], [], []>} : vector<16x32xbf16>, vector<32x8xbf16>, vector<16x8xf32> -> vector<16x8xf32>
    %c3_138 = arith.constant 3 : index
    %c0_139 = arith.constant 0 : index
    %c0_140 = arith.constant 0 : index
    %238 = vector.load %arg13[%c3_138, %c0_139, %c0_140] : memref<4x1x8xf32, #tpu.memory_space<vmem>>, vector<1x1x8xf32>
    %239 = vector.shape_cast %238 : vector<1x1x8xf32> to vector<1x8xf32>
    %240 = vector.broadcast %239 : vector<1x8xf32> to vector<16x8xf32>
    %241 = arith.addf %237, %240 : vector<16x8xf32>
    %cst_141 = arith.constant 0.353553385 : f32
    %242 = vector.broadcast %cst_141 : f32 to vector<8x8xf32>
    %243 = arith.mulf %227, %242 : vector<8x8xf32>
    %244 = arith.truncf %243 : vector<8x8xf32> to vector<8x8xbf16>
    %245 = arith.truncf %234 : vector<16x8xf32> to vector<16x8xbf16>
    %cst_142 = arith.constant dense<0.000000e+00> : vector<8x16xf32>
    %246 = tpu.matmul %244, %245, %cst_142 {dimension_numbers = #tpu.dot_dimension_numbers<[1], [1], [0], [0], [0, 0, 1, 0], [], []>} : vector<8x8xbf16>, vector<16x8xbf16>, vector<8x16xf32> -> vector<8x16xf32>
    %cst_143 = arith.constant dense<0xFF800000> : vector<8xf32>
    %247 = vector.multi_reduction <maximumf>, %246, %cst_143 [1] : vector<8x16xf32> to vector<8xf32>
    %248 = vector.shape_cast %247 : vector<8xf32> to vector<8x1xf32>
    %249 = vector.broadcast %248 : vector<8x1xf32> to vector<8x16xf32>
    %250 = arith.subf %246, %249 : vector<8x16xf32>
    %251 = math.exp %250 : vector<8x16xf32>
    %cst_144 = arith.constant dense<0.000000e+00> : vector<8xf32>
    %252 = vector.multi_reduction <add>, %251, %cst_144 [1] : vector<8x16xf32> to vector<8xf32>
    %253 = vector.shape_cast %252 : vector<8xf32> to vector<8x1xf32>
    %254 = tpu.reciprocal %253 {approx = true} : vector<8x1xf32> -> vector<8x1xf32>
    %255 = vector.broadcast %254 : vector<8x1xf32> to vector<8x16xf32>
    %256 = arith.mulf %251, %255 : vector<8x16xf32>
    %257 = arith.truncf %256 : vector<8x16xf32> to vector<8x16xbf16>
    %258 = arith.truncf %241 : vector<16x8xf32> to vector<16x8xbf16>
    %cst_145 = arith.constant dense<0.000000e+00> : vector<8x8xf32>
    %259 = tpu.matmul %257, %258, %cst_145 {dimension_numbers = #tpu.dot_dimension_numbers<[1], [0], [0], [1], [0, 0, 1, 1], [], []>} : vector<8x16xbf16>, vector<16x8xbf16>, vector<8x8xf32> -> vector<8x8xf32>
    %260 = arith.truncf %259 : vector<8x8xf32> to vector<8x8xbf16>
    %c3_146 = arith.constant 3 : index
    %c0_147 = arith.constant 0 : index
    %c0_148 = arith.constant 0 : index
    %261 = vector.load %arg14[%c3_146, %c0_147, %c0_148] : memref<4x8x32xbf16, #tpu.memory_space<vmem>>, vector<1x8x32xbf16>
    %262 = vector.shape_cast %261 : vector<1x8x32xbf16> to vector<8x32xbf16>
    %cst_149 = arith.constant dense<0.000000e+00> : vector<8x32xf32>
    %263 = tpu.matmul %260, %262, %cst_149 {dimension_numbers = #tpu.dot_dimension_numbers<[1], [0], [0], [1], [0, 0, 1, 1], [], []>} : vector<8x8xbf16>, vector<8x32xbf16>, vector<8x32xf32> -> vector<8x32xf32>
    %264 = arith.addf %220, %263 : vector<8x32xf32>
    %c0_150 = arith.constant 0 : index
    %c0_151 = arith.constant 0 : index
    %265 = vector.load %arg15[%c0_150, %c0_151] : memref<1x32xf32, #tpu.memory_space<vmem>>, vector<1x32xf32>
    %266 = vector.broadcast %265 : vector<1x32xf32> to vector<8x32xf32>
    %267 = arith.addf %264, %266 : vector<8x32xf32>
    %268 = vector.broadcast %21 : vector<1x32xf32> to vector<8x32xf32>
    %269 = arith.mulf %268, %267 : vector<8x32xf32>
    %270 = arith.addf %58, %269 : vector<8x32xf32>
    %c0_152 = arith.constant 0 : index
    %c0_153 = arith.constant 0 : index
    %271 = vector.load %arg16[%c0_152, %c0_153] : memref<1x32xf32, #tpu.memory_space<vmem>>, vector<1x32xf32>
    %c0_154 = arith.constant 0 : index
    %c0_155 = arith.constant 0 : index
    %272 = vector.load %arg17[%c0_154, %c0_155] : memref<1x32xf32, #tpu.memory_space<vmem>>, vector<1x32xf32>
    %cst_156 = arith.constant dense<0.000000e+00> : vector<8xf32>
    %273 = vector.multi_reduction <add>, %270, %cst_156 [1] : vector<8x32xf32> to vector<8xf32>
    %274 = vector.shape_cast %273 : vector<8xf32> to vector<8x1xf32>
    %cst_157 = arith.constant 3.200000e+01 : f32
    %275 = vector.broadcast %cst_157 : f32 to vector<8x1xf32>
    %276 = arith.divf %274, %275 : vector<8x1xf32>
    %277 = vector.broadcast %276 : vector<8x1xf32> to vector<8x32xf32>
    %278 = arith.subf %270, %277 : vector<8x32xf32>
    %279 = arith.mulf %278, %278 : vector<8x32xf32>
    %cst_158 = arith.constant dense<0.000000e+00> : vector<8xf32>
    %280 = vector.multi_reduction <add>, %279, %cst_158 [1] : vector<8x32xf32> to vector<8xf32>
    %281 = vector.shape_cast %280 : vector<8xf32> to vector<8x1xf32>
    %cst_159 = arith.constant 3.200000e+01 : f32
    %282 = vector.broadcast %cst_159 : f32 to vector<8x1xf32>
    %283 = arith.divf %281, %282 : vector<8x1xf32>
    %284 = vector.broadcast %276 : vector<8x1xf32> to vector<8x32xf32>
    %285 = arith.subf %270, %284 : vector<8x32xf32>
    %cst_160 = arith.constant 9.99999974E-6 : f32
    %286 = vector.broadcast %cst_160 : f32 to vector<8x1xf32>
    %287 = arith.addf %283, %286 : vector<8x1xf32>
    %288 = math.rsqrt %287 : vector<8x1xf32>
    %289 = vector.broadcast %288 : vector<8x1xf32> to vector<8x32xf32>
    %290 = arith.mulf %285, %289 : vector<8x32xf32>
    %291 = vector.broadcast %271 : vector<1x32xf32> to vector<8x32xf32>
    %292 = arith.mulf %290, %291 : vector<8x32xf32>
    %293 = vector.broadcast %272 : vector<1x32xf32> to vector<8x32xf32>
    %294 = arith.addf %292, %293 : vector<8x32xf32>
    %295 = vector.broadcast %25 : vector<1x32xf32> to vector<8x32xf32>
    %296 = arith.mulf %294, %295 : vector<8x32xf32>
    %297 = vector.broadcast %22 : vector<1x32xf32> to vector<8x32xf32>
    %298 = arith.addf %296, %297 : vector<8x32xf32>
    %299 = arith.truncf %298 : vector<8x32xf32> to vector<8x32xbf16>
    %c0_161 = arith.constant 0 : index
    %c0_162 = arith.constant 0 : index
    %300 = vector.load %arg18[%c0_161, %c0_162] : memref<32x128xbf16, #tpu.memory_space<vmem>>, vector<32x128xbf16>
    %cst_163 = arith.constant dense<0.000000e+00> : vector<8x128xf32>
    %301 = tpu.matmul %299, %300, %cst_163 {dimension_numbers = #tpu.dot_dimension_numbers<[1], [0], [0], [1], [0, 0, 1, 1], [], []>} : vector<8x32xbf16>, vector<32x128xbf16>, vector<8x128xf32> -> vector<8x128xf32>
    %c0_164 = arith.constant 0 : index
    %c0_165 = arith.constant 0 : index
    %302 = vector.load %arg19[%c0_164, %c0_165] : memref<1x128xf32, #tpu.memory_space<vmem>>, vector<1x128xf32>
    %303 = vector.broadcast %302 : vector<1x128xf32> to vector<8x128xf32>
    %304 = arith.addf %301, %303 : vector<8x128xf32>
    %305 = arith.mulf %304, %304 : vector<8x128xf32>
    %306 = arith.mulf %304, %305 : vector<8x128xf32>
    %cst_166 = arith.constant 4.471500e-02 : f32
    %307 = vector.broadcast %cst_166 : f32 to vector<8x128xf32>
    %308 = arith.mulf %307, %306 : vector<8x128xf32>
    %309 = arith.addf %304, %308 : vector<8x128xf32>
    %cst_167 = arith.constant 0.797884583 : f32
    %310 = vector.broadcast %cst_167 : f32 to vector<8x128xf32>
    %311 = arith.mulf %310, %309 : vector<8x128xf32>
    %312 = math.tanh %311 : vector<8x128xf32>
    %cst_168 = arith.constant 1.000000e+00 : f32
    %313 = vector.broadcast %cst_168 : f32 to vector<8x128xf32>
    %314 = arith.addf %313, %312 : vector<8x128xf32>
    %cst_169 = arith.constant 5.000000e-01 : f32
    %315 = vector.broadcast %cst_169 : f32 to vector<8x128xf32>
    %316 = arith.mulf %315, %314 : vector<8x128xf32>
    %317 = arith.mulf %304, %316 : vector<8x128xf32>
    %318 = arith.truncf %317 : vector<8x128xf32> to vector<8x128xbf16>
    %c0_170 = arith.constant 0 : index
    %c0_171 = arith.constant 0 : index
    %319 = vector.load %arg20[%c0_170, %c0_171] : memref<128x32xbf16, #tpu.memory_space<vmem>>, vector<128x32xbf16>
    %cst_172 = arith.constant dense<0.000000e+00> : vector<8x32xf32>
    %320 = tpu.matmul %318, %319, %cst_172 {dimension_numbers = #tpu.dot_dimension_numbers<[1], [0], [0], [1], [0, 0, 1, 1], [], []>} : vector<8x128xbf16>, vector<128x32xbf16>, vector<8x32xf32> -> vector<8x32xf32>
    %c0_173 = arith.constant 0 : index
    %c0_174 = arith.constant 0 : index
    %321 = vector.load %arg21[%c0_173, %c0_174] : memref<1x32xf32, #tpu.memory_space<vmem>>, vector<1x32xf32>
    %322 = vector.broadcast %321 : vector<1x32xf32> to vector<8x32xf32>
    %323 = arith.addf %320, %322 : vector<8x32xf32>
    %324 = vector.broadcast %26 : vector<1x32xf32> to vector<8x32xf32>
    %325 = arith.mulf %324, %323 : vector<8x32xf32>
    %326 = arith.addf %270, %325 : vector<8x32xf32>
    %c0_175 = arith.constant 0 : index
    %c0_176 = arith.constant 0 : index
    %c0_177 = arith.constant 0 : index
    %327 = vector.load %arg22[%c0_175, %c0_176, %c0_177] : memref<1x8x32xf32, #tpu.memory_space<vmem>>, vector<1x8x32xf32>
    %328 = vector.shape_cast %327 : vector<1x8x32xf32> to vector<8x32xf32>
    %329 = vector.shape_cast %326 : vector<8x32xf32> to vector<1x8x32xf32>
    tpu.vector_store %arg22[%c0_175, %c0_176, %c0_177], %329 {strides = array<i32>} : memref<1x8x32xf32, #tpu.memory_space<vmem>>, vector<1x8x32xf32>,
    return
  }
  func.func @transform_0(%arg0: i32, %arg1: i32) -> (i32, i32, i32) {
    %c0_i32 = arith.constant 0 : i32
    %c0_i32_0 = arith.constant 0 : i32
    %c0_i32_1 = arith.constant 0 : i32
    return %arg0, %c0_i32, %c0_i32_0 : i32, i32, i32
  }
  func.func @transform_1(%arg0: i32, %arg1: i32) -> (i32, i32, i32) {
    %c0_i32 = arith.constant 0 : i32
    %c0_i32_0 = arith.constant 0 : i32
    %c0_i32_1 = arith.constant 0 : i32
    return %arg0, %c0_i32, %c0_i32_0 : i32, i32, i32
  }
  func.func @transform_2(%arg0: i32, %arg1: i32) -> (i32, i32) {
    %c0_i32 = arith.constant 0 : i32
    %c0_i32_0 = arith.constant 0 : i32
    %c0_i32_1 = arith.constant 0 : i32
    return %c0_i32, %c0_i32_0 : i32, i32
  }
  func.func @transform_3(%arg0: i32, %arg1: i32) -> (i32, i32) {
    %c0_i32 = arith.constant 0 : i32
    %c0_i32_0 = arith.constant 0 : i32
    %c0_i32_1 = arith.constant 0 : i32
    return %c0_i32, %c0_i32_0 : i32, i32
  }
  func.func @transform_4(%arg0: i32, %arg1: i32) -> (i32, i32) {
    %c0_i32 = arith.constant 0 : i32
    %c0_i32_0 = arith.constant 0 : i32
    %c0_i32_1 = arith.constant 0 : i32
    return %c0_i32, %c0_i32_0 : i32, i32
  }
  func.func @transform_5(%arg0: i32, %arg1: i32) -> (i32, i32) {
    %c0_i32 = arith.constant 0 : i32
    %c0_i32_0 = arith.constant 0 : i32
    %c0_i32_1 = arith.constant 0 : i32
    return %c0_i32, %c0_i32_0 : i32, i32
  }
  func.func @transform_6(%arg0: i32, %arg1: i32) -> (i32, i32, i32) {
    %c0_i32 = arith.constant 0 : i32
    %c0_i32_0 = arith.constant 0 : i32
    %c0_i32_1 = arith.constant 0 : i32
    %c0_i32_2 = arith.constant 0 : i32
    return %c0_i32, %c0_i32_0, %c0_i32_1 : i32, i32, i32
  }
  func.func @transform_7(%arg0: i32, %arg1: i32) -> (i32, i32, i32) {
    %c0_i32 = arith.constant 0 : i32
    %c0_i32_0 = arith.constant 0 : i32
    %c0_i32_1 = arith.constant 0 : i32
    %c0_i32_2 = arith.constant 0 : i32
    return %c0_i32, %c0_i32_0, %c0_i32_1 : i32, i32, i32
  }
  func.func @transform_8(%arg0: i32, %arg1: i32) -> (i32, i32, i32) {
    %c0_i32 = arith.constant 0 : i32
    %c0_i32_0 = arith.constant 0 : i32
    %c0_i32_1 = arith.constant 0 : i32
    %c0_i32_2 = arith.constant 0 : i32
    return %c0_i32, %c0_i32_0, %c0_i32_1 : i32, i32, i32
  }
  func.func @transform_9(%arg0: i32, %arg1: i32) -> (i32, i32, i32) {
    %c0_i32 = arith.constant 0 : i32
    %c0_i32_0 = arith.constant 0 : i32
    %c0_i32_1 = arith.constant 0 : i32
    %c0_i32_2 = arith.constant 0 : i32
    return %c0_i32, %c0_i32_0, %c0_i32_1 : i32, i32, i32
  }
  func.func @transform_10(%arg0: i32, %arg1: i32) -> (i32, i32, i32) {
    %c0_i32 = arith.constant 0 : i32
    %c0_i32_0 = arith.constant 0 : i32
    %c0_i32_1 = arith.constant 0 : i32
    %c0_i32_2 = arith.constant 0 : i32
    return %c0_i32, %c0_i32_0, %c0_i32_1 : i32, i32, i32
  }
  func.func @transform_11(%arg0: i32, %arg1: i32) -> (i32, i32, i32) {
    %c0_i32 = arith.constant 0 : i32
    %c0_i32_0 = arith.constant 0 : i32
    %c0_i32_1 = arith.constant 0 : i32
    %c0_i32_2 = arith.constant 0 : i32
    return %c0_i32, %c0_i32_0, %c0_i32_1 : i32, i32, i32
  }
  func.func @transform_12(%arg0: i32, %arg1: i32) -> (i32, i32, i32) {
    %c0_i32 = arith.constant 0 : i32
    %c0_i32_0 = arith.constant 0 : i32
    %c0_i32_1 = arith.constant 0 : i32
    %c0_i32_2 = arith.constant 0 : i32
    return %c0_i32, %c0_i32_0, %c0_i32_1 : i32, i32, i32
  }
  func.func @transform_13(%arg0: i32, %arg1: i32) -> (i32, i32) {
    %c0_i32 = arith.constant 0 : i32
    %c0_i32_0 = arith.constant 0 : i32
    %c0_i32_1 = arith.constant 0 : i32
    return %c0_i32, %c0_i32_0 : i32, i32
  }
  func.func @transform_14(%arg0: i32, %arg1: i32) -> (i32, i32) {
    %c0_i32 = arith.constant 0 : i32
    %c0_i32_0 = arith.constant 0 : i32
    %c0_i32_1 = arith.constant 0 : i32
    return %c0_i32, %c0_i32_0 : i32, i32
  }
  func.func @transform_15(%arg0: i32, %arg1: i32) -> (i32, i32) {
    %c0_i32 = arith.constant 0 : i32
    %c0_i32_0 = arith.constant 0 : i32
    %c0_i32_1 = arith.constant 0 : i32
    return %c0_i32, %c0_i32_0 : i32, i32
  }
  func.func @transform_16(%arg0: i32, %arg1: i32) -> (i32, i32) {
    %c0_i32 = arith.constant 0 : i32
    %c0_i32_0 = arith.constant 0 : i32
    %c0_i32_1 = arith.constant 0 : i32
    return %c0_i32, %c0_i32_0 : i32, i32
  }
  func.func @transform_17(%arg0: i32, %arg1: i32) -> (i32, i32) {
    %c0_i32 = arith.constant 0 : i32
    %c0_i32_0 = arith.constant 0 : i32
    %c0_i32_1 = arith.constant 0 : i32
    return %c0_i32, %c0_i32_0 : i32, i32
  }
  func.func @transform_18(%arg0: i32, %arg1: i32) -> (i32, i32) {
    %c0_i32 = arith.constant 0 : i32
    %c0_i32_0 = arith.constant 0 : i32
    %c0_i32_1 = arith.constant 0 : i32
    return %c0_i32, %c0_i32_0 : i32, i32
  }
  func.func @transform_19(%arg0: i32, %arg1: i32) -> (i32, i32) {
    %c0_i32 = arith.constant 0 : i32
    %c0_i32_0 = arith.constant 0 : i32
    %c0_i32_1 = arith.constant 0 : i32
    return %c0_i32, %c0_i32_0 : i32, i32
  }
  func.func @transform_20(%arg0: i32, %arg1: i32) -> (i32, i32, i32) {
    %c0_i32 = arith.constant 0 : i32
    %c0_i32_0 = arith.constant 0 : i32
    return %arg0, %arg1, %c0_i32 : i32, i32, i32
  }
}

</mosaic_0001>

<bundles_post_ra>
// kernel: tpu_custom_call.1
= control target key start
LH: loop header
LB: loop body
LE: loop exit
PB: predicated region body
PF: predicated region fallthrough
CT: control target
= control target key end

     0   :  { %s5646_s0 = inlined_call_operand.hbm [shape: f32[2,16,32], index: 0, kind: input, shape index: {}]   ;;  %s5647_s1 = inlined_call_operand.hbm [shape: f32[2,1,32], index: 1, kind: input, shape index: {}]   ;;  %s5648_s2 = inlined_call_operand.hbm [shape: bf16[32,192], index: 2, kind: input, shape index: {}]   ;;  %s5649_s3 = inlined_call_operand.hbm [shape: f32[1,192], index: 3, kind: input, shape index: {}]   ;;  %s5650_s4 = inlined_call_operand.hbm [shape: f32[1,32], index: 4, kind: input, shape index: {}]   ;;  %s5651_s5 = inlined_call_operand.hbm [shape: f32[1,32], index: 5, kind: input, shape index: {}]   ;;  %s5652_s6 = inlined_call_operand.hbm [shape: bf16[4,32,8], index: 6, kind: input, shape index: {}]   ;;  %s5653_s7 = inlined_call_operand.hbm [shape: bf16[4,32,8], index: 7, kind: input, shape index: {}]   ;;  %s5654_s8 = inlined_call_operand.hbm [shape: bf16[4,32,8], index: 8, kind: input, shape index: {}]   ;;  %s5655_s9 = inlined_call_operand.hbm [shape: f32[4,1,8], index: 9, kind: input, shape index: {}]   ;;  %s5656_s10 = inlined_call_operand.hbm [shape: f32[4,1,8], index: 10, kind: input, shape index: {}]   ;;  %s5657_s11 = inlined_call_operand.hbm [shape: f32[4,1,8], index: 11, kind: input, shape index: {}]   ;;  %s5658_s12 = inlined_call_operand.hbm [shape: bf16[4,8,32], index: 12, kind: input, shape index: {}]   ;;  %s5659_s13 = inlined_call_operand.hbm [shape: f32[1,32], index: 13, kind: input, shape index: {}]   ;;  %s5660_s14 = inlined_call_operand.hbm [shape: f32[1,32], index: 14, kind: input, shape index: {}]   ;;  %s5661_s15 = inlined_call_operand.hbm [shape: f32[1,32], index: 15, kind: input, shape index: {}]   ;;  %s5662_s16 = inlined_call_operand.hbm [shape: bf16[32,128], index: 16, kind: input, shape index: {}]   ;;  %s5663_s17 = inlined_call_operand.hbm [shape: f32[1,128], index: 17, kind: input, shape index: {}]   ;;  %s5664_s18 = inlined_call_operand.hbm [shape: bf16[128,32], index: 18, kind: input, shape index: {}]   ;;  %s5665_s19 = inlined_call_operand.hbm [shape: f32[1,32], index: 19, kind: input, shape index: {}]   ;;  %s5666_s20 = inlined_call_operand.hbm [shape: f32[2,16,32], index: 20, kind: output, shape index: {}]  }
   0x1   :  { %5706 = sst [smem:[#allocation61_spill]] %s5646_s0 }
   0x2   :  { %5707 = sst [smem:[#allocation62_spill]] %s5647_s1 }
   0x3   :  { %5708 = sst [smem:[#allocation63_spill]] %s5648_s2 }
   0x4   :  { %5709 = sst [smem:[#allocation64_spill]] %s5649_s3 }
   0x5   :  { %5710 = sst [smem:[#allocation65_spill]] %s5650_s4 }
   0x6   :  { %5711 = sst [smem:[#allocation66_spill]] %s5651_s5 }
   0x7   :  { %5712 = sst [smem:[#allocation67_spill]] %s5652_s6 }
   0x8   :  { %5713 = sst [smem:[#allocation68_spill]] %s5653_s7 }
   0x9   :  { %5714 = sst [smem:[#allocation69_spill]] %s5654_s8 }
   0xa   :  { %5715 = sst [smem:[#allocation70_spill]] %s5655_s9 }
   0xb   :  { %5716 = sst [smem:[#allocation71_spill]] %s5656_s10 }
   0xc   :  { %5717 = sst [smem:[#allocation72_spill]] %s5657_s11 }
   0xd   :  { %5718 = sst [smem:[#allocation73_spill]] %s5658_s12 }
   0xe   :  { %5719 = sst [smem:[#allocation74_spill]] %s5659_s13 }
   0xf   :  { %5720 = sst [smem:[#allocation75_spill]] %s5660_s14 }
  0x10   :  { %5721 = sst [smem:[#allocation76_spill]] %s5662_s16 }
  0x11   :  { %5722 = sst [smem:[#allocation77_spill]] %s5664_s18 }
  0x12   :  { %5723 = sst [smem:[#allocation78_spill]] %s5665_s19 }
  0x13   :  { %5724 = sst [smem:[#allocation79_spill]] %s5666_s20 }
  0x14   :  { %25 = vsyncpa [#allocation3], 0 }
  0x15   :  { %27 = vsyncpa [#allocation3 + $0x1], 0 }
  0x16   :  { %28 = vsyncpa [#allocation6], 0 }
  0x17   :  { %30 = vsyncpa [#allocation6 + $0x1], 0 }
  0x18   :  { %31 = vsyncpa [#allocation9], 0 }
  0x19   :  { %32 = vsyncpa [#allocation12], 0 }
  0x1a   :  { %33 = vsyncpa [#allocation15], 0 }
  0x1b   :  { %34 = vsyncpa [#allocation18], 0 }
  0x1c   :  { %35 = vsyncpa [#allocation21], 0 }
  0x1d   :  { %36 = vsyncpa [#allocation24], 0 }
  0x1e   :  { %37 = vsyncpa [#allocation27], 0 }
  0x1f   :  { %38 = vsyncpa [#allocation30], 0 }
  0x20   :  { %39 = vsyncpa [#allocation33], 0 }
  0x21   :  { %40 = vsyncpa [#allocation4], 0 }
  0x22   :  { %42 = vsyncpa [#allocation4 + $0x1], 0  ;;  %s4726_s1 = smov 0   ;;  %s4728_s22 = smov 0  }
  0x23   :  { %s4730_s23 = smov 0   ;;  %s4732_s24 = smov 0  }
  0x24   :  { %s4734_s2 = smov 0   ;;  %s4736_s25 = smov 0  }
  0x25   :  { %s4738_s3 = smov 0   ;;  %s4740_s26 = smov 0  }
  0x26   :  { %s4742_s27 = smov 0   ;;  %s4744_s28 = smov 0  }
  0x27   :  { %5725 = sst [smem:[#allocation48_spill]] %s4742_s27  ;;  %s4746_s4 = smov 0  }
  0x28 LB: > { %s5727_s27 = sld [smem:[#allocation48_spill]]  ;;  %5729 = sst [smem:[#allocation49_spill]] %s4550_s22  ;;  %s4586_s4 = sphi %s4746_s4, %s48_s4   ;;  %s4582_s28 = sphi %s4744_s28, %s5833_s28   ;;  %s4574_s26 = sphi %s4740_s26, %s5826_s26   ;;  %s4570_s3 = sphi %s4738_s3, %s5825_s3   ;;  %s4566_s25 = sphi %s4736_s25, %s5831_s25   ;;  %s4562_s2 = sphi %s4734_s2, %s5830_s2   ;;  %s4558_s24 = sphi %s4732_s24, %s5829_s24   ;;  %s4554_s23 = sphi %s4730_s23, %s5828_s23   ;;  %s4550_s22 = sphi %s4728_s22, %s5822_s22   ;;  %s4546_s1 = sphi %s4726_s1, %s5821_s1  }
  0x29   : > { %5728 = sst [smem:[#allocation48_spill]] %s4546_s1  ;;  %s4782_s29 = sadd.s32 4294967295, %s4586_s4  }
  0x2a   : > { %5730 = sst [smem:[#allocation50_spill]] %s4554_s23  ;;  %p3081_p0 = scmp.ge.s32.totalorder %s4586_s4, 1 }
  0x2b   : > { %5731 = sst [smem:[#allocation51_spill]] %s4558_s24  ;;  %p5690_p1 = scmp.eq.s32.totalorder %s4782_s29, 0 }
  0x2c   : > { %5732 = sst [smem:[#allocation52_spill]] %s4562_s2  ;;  %p523_p2 = scmp.lt.s32.totalorder %s4586_s4, 5 }
  0x2d   : > { %5733 = sst [smem:[#allocation53_spill]] %s4566_s25  ;;  %s4588_s0 = smov [#allocation7]  }
  0x2e   : > { %5734 = sst [smem:[#allocation54_spill]] %s4570_s3  ;;  %p4787_p3 = pnand %p3081_p0, %p523_p2 }
  0x2f   : > { %5735 = sst [smem:[#allocation55_spill]] %s4574_s26  ;;  %s535_s21 = sshll.u32 %s4588_s0, 4  ;;  %s4791_s21 = int_to_ptr.vmem [resolvable:$true] %s535_s21 }
  0x30   : > { %5736 = sst [smem:[#allocation56_spill]] %s5727_s27  ;;  %p3563_p4 = pneg %p4787_p3 }
  0x31   : > { %5737 = sst [smem:[#allocation57_spill]] %s4582_s28  ;;  %s4589_s26 = smov [#allocation8]  }
  0x32   : > { %5738 = sst [smem:[#allocation58_spill]] %s4586_s4  ;;  %p4797_p5 = pnand %p3563_p4, %p5690_p1 }
  0x33   : > { %5739 = sst [smem:[#allocation59_spill]] %s4782_s29  ;;  %s549_s3 = sshll.u32 %s4589_s26, 4  ;;  %s4801_s3 = int_to_ptr.vmem [resolvable:$true] %s549_s3 }
  0x34   : > { %s5740_s30 = scalar_select %p4787_p3, 1, 0 }
  0x35   : > { %s4590_s1 = smov [#allocation11]   ;;  %s5743_s0 = sld [smem:[#allocation63_spill]] }
  0x36   : > { %5741 = sst [smem:[#allocation60_spill]] %s5740_s30  ;;  %s4803_s22 = sshll.u32 %s4590_s1, 4  ;;  %s572_s22 = int_to_ptr.vmem [resolvable:$true] %s4803_s22 }
  0x37   : > { %p4813_p7 = pneg %p4797_p5 }
  0x3b   : > { %s3856_s2 = scalar_lea.hbm %s5743_s0, 512 }
  0x3c   : > { %p3857_p6 = scmp.ne.s32.totalorder %s5743_s0, %s3856_s2  ;;  %p3863_p10 = scmp.lt.u32.totalorder %s3856_s2, %s5743_s0 }
  0x3e   : > { %p3859_p8 = pnand %p4813_p7, %p3857_p6 }
  0x40   : > { %p3860_p9 = pneg %p3859_p8 }
  0x42   : > { %p3865_p11 = pnand %p3863_p10, %p3860_p9 }
  0x44   : > { %3868 = shalt.err (!%p3865_p11)
}
  0x45   : > { %s3869_s23 = scalar_lea.vmem %s4791_s21, 512  ;;  %p3877_p2 = scmp.lt.s32.totalorder %s4791_s21, %s4791_s21 }
  0x46   : > { %p3870_p12 = scmp.ne.s32.totalorder %s4791_s21, %s3869_s23  ;;  %p3878_p4 = scmp.lt.s32.totalorder %s3869_s23, %s3869_s23 }
  0x48   : > { %p3872_p13 = pnand %p3870_p12, %p4813_p7  ;;  %p3879_p6 = por %p3878_p4, %p3877_p2 }
  0x4a   : > { %p3873_p0 = pneg %p3872_p13 }
  0x4c   : > { %p3880_p8 = pnand %p3879_p6, %p3873_p0 }
  0x4e   : > { %3883 = shalt.err (!%p3880_p8)
}
  0x4f   : > { %s5692_s24 = smov 128   ;;  %s5693_s2 = smov 8  }
  0x50   : > { %3566 = dma.hbm_to_vmem [thread:$0]  (!%p4797_p5), %s5743_s0, 512, %s4791_s21, [#allocation6], %s5692_s24, %s5692_s24, %s5693_s2  }
  0x51   : > { %s5745_s28 = sld [smem:[#allocation64_spill]] }
  0x57   : > { %s5746_s19 = smov %s5745_s28  ;;  %s3884_s23 = scalar_lea.hbm %s5745_s28, 32 }
  0x58   : > { %p3885_p9 = scmp.ne.s32.totalorder %s5746_s19, %s3884_s23  ;;  %p3891_p12 = scmp.lt.u32.totalorder %s3884_s23, %s5746_s19 }
  0x5a   : > { %p3887_p10 = pnand %p3885_p9, %p4813_p7 }
  0x5c   : > { %p3888_p11 = pneg %p3887_p10 }
  0x5e   : > { %p3893_p13 = pnand %p3891_p12, %p3888_p11 }
  0x60   : > { %3896 = shalt.err (!%p3893_p13)
}
  0x61   : > { %s3897_s21 = scalar_lea.vmem %s4801_s3, 32  ;;  %p3905_p6 = scmp.lt.s32.totalorder %s4801_s3, %s4801_s3 }
  0x62   : > { %p3898_p0 = scmp.ne.s32.totalorder %s4801_s3, %s3897_s21  ;;  %p3906_p8 = scmp.lt.s32.totalorder %s3897_s21, %s3897_s21 }
  0x64   : > { %p3900_p2 = pnand %p3898_p0, %p4813_p7  ;;  %p3907_p9 = por %p3906_p8, %p3905_p6 }
  0x66   : > { %p3901_p4 = pneg %p3900_p2 }
  0x68   : > { %p3908_p10 = pnand %p3907_p9, %p3901_p4 }
  0x6a   : > { %3911 = shalt.err (!%p3908_p10)
}
  0x6b   : > { %3569 = dma.hbm_to_vmem [thread:$0]  (!%p4797_p5), %s5746_s19, 32, %s4801_s3, [#allocation9]  }
  0x6c   : > { %s5747_s5 = sld [smem:[#allocation66_spill]] }
  0x72   : > { %s3912_s4 = scalar_lea.hbm %s5747_s5, 16 }
  0x73   : > { %p3913_p11 = scmp.ne.s32.totalorder %s5747_s5, %s3912_s4  ;;  %p3919_p0 = scmp.lt.u32.totalorder %s3912_s4, %s5747_s5 }
  0x75   : > { %p3915_p12 = pnand %p3913_p11, %p4813_p7 }
  0x77   : > { %p3916_p13 = pneg %p3915_p12 }
  0x79   : > { %p3921_p2 = pnand %p3919_p0, %p3916_p13 }
  0x7b   : > { %3924 = shalt.err (!%p3921_p2)
}
  0x7c   : > { %s3925_s23 = scalar_lea.vmem %s572_s22, 16  ;;  %s3932_s3 = scalar_lea.vmem %s572_s22, 32 }
  0x7d   : > { %p3926_p4 = scmp.ne.s32.totalorder %s572_s22, %s3925_s23  ;;  %p3933_p9 = scmp.lt.s32.totalorder %s572_s22, %s572_s22 }
  0x7e   : > { %p3934_p10 = scmp.lt.s32.totalorder %s3932_s3, %s3925_s23 }
  0x7f   : > { %p3928_p6 = pnand %p3926_p4, %p4813_p7 }
  0x80   : > { %p3935_p1 = por %p3934_p10, %p3933_p9 }
  0x81   : > { %p3929_p8 = pneg %p3928_p6 }
  0x83   : > { %p3936_p3 = pnand %p3935_p1, %p3929_p8 }
  0x85   : > { %3939 = shalt.err (!%p3936_p3)
}
  0x86   : > { %3575 = dma.hbm_to_vmem [thread:$0]  (!%p4797_p5), %s5747_s5, 16, %s572_s22, [#allocation12]  }
  0x87   : > { %s4593_s18 = smov [#allocation14]   ;;  %s4594_s28 = smov [#allocation17]  }
  0x88   : > { %s594_s27 = sshll.u32 %s4593_s18, 4  ;;  %s620_s4 = sshll.u32 %s4594_s28, 4  ;;  %s595_s27 = int_to_ptr.vmem [resolvable:$true] %s594_s27  ;;  %s621_s4 = int_to_ptr.vmem [resolvable:$true] %s620_s4 }
  0x89   : > { %s5748_s7 = sld [smem:[#allocation68_spill]] }
  0x8f   : > { %s3940_s26 = scalar_lea.hbm %s5748_s7, 1024 }
  0x90   : > { %p3941_p1 = scmp.ne.s32.totalorder %s5748_s7, %s3940_s26  ;;  %p3947_p12 = scmp.lt.u32.totalorder %s3940_s26, %s5748_s7 }
  0x92   : > { %p3943_p3 = pnand %p3941_p1, %p4813_p7 }
  0x94   : > { %p3944_p11 = pneg %p3943_p3 }
  0x96   : > { %p3949_p13 = pnand %p3947_p12, %p3944_p11 }
  0x98   : > { %3952 = shalt.err (!%p3949_p13)
}
  0x99   : > { %s3953_s22 = scalar_lea.vmem %s595_s27, 1024  ;;  %p3961_p6 = scmp.lt.s32.totalorder %s595_s27, %s595_s27 }
  0x9a   : > { %p3954_p0 = scmp.ne.s32.totalorder %s595_s27, %s3953_s22  ;;  %p3962_p8 = scmp.lt.s32.totalorder %s3953_s22, %s3953_s22 }
  0x9c   : > { %p3956_p2 = pnand %p3954_p0, %p4813_p7  ;;  %p3963_p9 = por %p3962_p8, %p3961_p6 }
  0x9e   : > { %p3957_p4 = pneg %p3956_p2 }
  0xa0   : > { %p3964_p10 = pnand %p3963_p9, %p3957_p4 }
  0xa2   : > { %3967 = shalt.err (!%p3964_p10)
}
  0xa3   : > { %s5694_s16 = smov 64   ;;  %s5696_s18 = smov 4  }
  0xa4   : > { %3581 = dma.hbm_to_vmem [thread:$0]  (!%p4797_p5), %s5748_s7, 1024, %s595_s27, [#allocation15], %s5694_s16, %s5694_s16, %s5696_s18  }
  0xa5   : > { %s5749_s9 = sld [smem:[#allocation70_spill]] }
  0xab   : > { %s3968_s1 = scalar_lea.hbm %s5749_s9, 64 }
  0xac   : > { %p3969_p1 = scmp.ne.s32.totalorder %s5749_s9, %s3968_s1  ;;  %p3975_p12 = scmp.lt.u32.totalorder %s3968_s1, %s5749_s9 }
  0xae   : > { %p3971_p3 = pnand %p3969_p1, %p4813_p7 }
  0xb0   : > { %p3972_p11 = pneg %p3971_p3 }
  0xb2   : > { %p3977_p13 = pnand %p3975_p12, %p3972_p11 }
  0xb4   : > { %3980 = shalt.err (!%p3977_p13)
}
  0xb5   : > { %s3981_s28 = scalar_lea.vmem %s621_s4, 64  ;;  %p3989_p6 = scmp.lt.s32.totalorder %s621_s4, %s621_s4 }
  0xb6   : > { %p3982_p0 = scmp.ne.s32.totalorder %s621_s4, %s3981_s28  ;;  %p3990_p8 = scmp.lt.s32.totalorder %s3981_s28, %s3981_s28 }
  0xb8   : > { %p3984_p2 = pnand %p3982_p0, %p4813_p7  ;;  %p3991_p9 = por %p3990_p8, %p3989_p6 }
  0xba   : > { %p3985_p4 = pneg %p3984_p2 }
  0xbc   : > { %p3992_p10 = pnand %p3991_p9, %p3985_p4 }
  0xbe   : > { %3995 = shalt.err (!%p3992_p10)
}
  0xbf   : > { %s5699_s27 = smov 16   ;;  %s5700_s25 = smov 1  }
  0xc0   : > { %3587 = dma.hbm_to_vmem [thread:$0]  (!%p4797_p5), %s5749_s9, 64, %s621_s4, [#allocation18], %s5699_s27, %s5699_s27, %s5700_s25  }
  0xc1   : > { %s4599_s1 = smov [#allocation20]   ;;  %s4600_s3 = smov [#allocation23]  }
  0xc2   : > { %s646_s23 = sshll.u32 %s4599_s1, 4  ;;  %s673_s21 = sshll.u32 %s4600_s3, 4  ;;  %s647_s23 = int_to_ptr.vmem [resolvable:$true] %s646_s23  ;;  %s674_s21 = int_to_ptr.vmem [resolvable:$true] %s673_s21 }
  0xc3   : > { %s5750_s11 = sld [smem:[#allocation72_spill]] }
  0xc9   : > { %s3996_s24 = scalar_lea.hbm %s5750_s11, 64 }
  0xca   : > { %p3997_p1 = scmp.ne.s32.totalorder %s5750_s11, %s3996_s24  ;;  %p4003_p12 = scmp.lt.u32.totalorder %s3996_s24, %s5750_s11 }
  0xcc   : > { %p3999_p3 = pnand %p3997_p1, %p4813_p7 }
  0xce   : > { %p4000_p11 = pneg %p3999_p3 }
  0xd0   : > { %p4005_p13 = pnand %p4003_p12, %p4000_p11 }
  0xd2   : > { %4008 = shalt.err (!%p4005_p13)
}
  0xd3   : > { %s4009_s4 = scalar_lea.vmem %s647_s23, 64  ;;  %p4017_p6 = scmp.lt.s32.totalorder %s647_s23, %s647_s23 }
  0xd4   : > { %p4010_p0 = scmp.ne.s32.totalorder %s647_s23, %s4009_s4  ;;  %p4018_p8 = scmp.lt.s32.totalorder %s4009_s4, %s4009_s4 }
  0xd6   : > { %p4012_p2 = pnand %p4010_p0, %p4813_p7  ;;  %p4019_p9 = por %p4018_p8, %p4017_p6 }
  0xd8   : > { %p4013_p4 = pneg %p4012_p2 }
  0xda   : > { %p4020_p10 = pnand %p4019_p9, %p4013_p4 }
  0xdc   : > { %4023 = shalt.err (!%p4020_p10)
}
  0xdd   : > { %3593 = dma.hbm_to_vmem [thread:$0]  (!%p4797_p5), %s5750_s11, 64, %s647_s23, [#allocation21], %s5699_s27, %s5699_s27, %s5700_s25  }
  0xde   : > { %s5751_s13 = sld [smem:[#allocation74_spill]] }
  0xe4   : > { %s4024_s18 = scalar_lea.hbm %s5751_s13, 16 }
  0xe5   : > { %p4025_p1 = scmp.ne.s32.totalorder %s5751_s13, %s4024_s18  ;;  %p4031_p12 = scmp.lt.u32.totalorder %s4024_s18, %s5751_s13 }
  0xe7   : > { %p4027_p3 = pnand %p4025_p1, %p4813_p7 }
  0xe9   : > { %p4028_p11 = pneg %p4027_p3 }
  0xeb   : > { %p4033_p13 = pnand %p4031_p12, %p4028_p11 }
  0xed   : > { %4036 = shalt.err (!%p4033_p13)
}
  0xee   : > { %s4037_s22 = scalar_lea.vmem %s674_s21, 16  ;;  %s4044_s23 = scalar_lea.vmem %s674_s21, 32 }
  0xef   : > { %p4038_p0 = scmp.ne.s32.totalorder %s674_s21, %s4037_s22  ;;  %p4045_p6 = scmp.lt.s32.totalorder %s674_s21, %s674_s21 }
  0xf0   : > { %p4046_p8 = scmp.lt.s32.totalorder %s4044_s23, %s4037_s22 }
  0xf1   : > { %p4040_p2 = pnand %p4038_p0, %p4813_p7 }
  0xf2   : > { %p4047_p9 = por %p4046_p8, %p4045_p6 }
  0xf3   : > { %p4041_p4 = pneg %p4040_p2 }
  0xf5   : > { %p4048_p10 = pnand %p4047_p9, %p4041_p4 }
  0xf7   : > { %4051 = shalt.err (!%p4048_p10)
}
  0xf8   : > { %3599 = dma.hbm_to_vmem [thread:$0]  (!%p4797_p5), %s5751_s13, 16, %s674_s21, [#allocation24]  }
  0xf9   : > { %s4601_s0 = smov [#allocation26]   ;;  %s4602_s2 = smov [#allocation29]  }
  0xfa   : > { %s695_s24 = sshll.u32 %s4601_s0, 4  ;;  %s719_s16 = sshll.u32 %s4602_s2, 4  ;;  %s696_s24 = int_to_ptr.vmem [resolvable:$true] %s695_s24  ;;  %s720_s16 = int_to_ptr.vmem [resolvable:$true] %s719_s16 }
  0xfb   : > { %s4052_s26 = scalar_lea.hbm %s5661_s15, 16 }
  0xfc   : > { %p4053_p1 = scmp.ne.s32.totalorder %s5661_s15, %s4052_s26  ;;  %p4059_p12 = scmp.lt.u32.totalorder %s4052_s26, %s5661_s15 }
  0xfe   : > { %p4055_p3 = pnand %p4053_p1, %p4813_p7 }
 0x100   : > { %p4056_p11 = pneg %p4055_p3 }
 0x102   : > { %p4061_p13 = pnand %p4059_p12, %p4056_p11 }
 0x104   : > { %4064 = shalt.err (!%p4061_p13)
}
 0x105   : > { %s4065_s21 = scalar_lea.vmem %s696_s24, 16  ;;  %s4072_s28 = scalar_lea.vmem %s696_s24, 32 }
 0x106   : > { %p4066_p0 = scmp.ne.s32.totalorder %s696_s24, %s4065_s21  ;;  %p4073_p6 = scmp.lt.s32.totalorder %s696_s24, %s696_s24 }
 0x107   : > { %p4074_p8 = scmp.lt.s32.totalorder %s4072_s28, %s4065_s21 }
 0x108   : > { %p4068_p2 = pnand %p4066_p0, %p4813_p7 }
 0x109   : > { %p4075_p9 = por %p4074_p8, %p4073_p6 }
 0x10a   : > { %p4069_p4 = pneg %p4068_p2 }
 0x10c   : > { %p4076_p10 = pnand %p4075_p9, %p4069_p4 }
 0x10e   : > { %4079 = shalt.err (!%p4076_p10)
}
 0x10f   : > { %3605 = dma.hbm_to_vmem [thread:$0]  (!%p4797_p5), %s5661_s15, 16, %s696_s24, [#allocation27]  }
 0x110   : > { %s4080_s30 = scalar_lea.hbm %s5663_s17, 16 }
 0x111   : > { %p4081_p1 = scmp.ne.s32.totalorder %s5663_s17, %s4080_s30  ;;  %p4087_p12 = scmp.lt.u32.totalorder %s4080_s30, %s5663_s17 }
 0x113   : > { %p4083_p3 = pnand %p4081_p1, %p4813_p7 }
 0x115   : > { %p4084_p11 = pneg %p4083_p3 }
 0x117   : > { %p4089_p13 = pnand %p4087_p12, %p4084_p11 }
 0x119   : > { %4092 = shalt.err (!%p4089_p13)
}
 0x11a   : > { %s4093_s23 = scalar_lea.vmem %s720_s16, 16  ;;  %s4100_s24 = scalar_lea.vmem %s720_s16, 32 }
 0x11b   : > { %p4094_p0 = scmp.ne.s32.totalorder %s720_s16, %s4093_s23  ;;  %p4101_p6 = scmp.lt.s32.totalorder %s720_s16, %s720_s16 }
 0x11c   : > { %p4102_p8 = scmp.lt.s32.totalorder %s4100_s24, %s4093_s23 }
 0x11d   : > { %p4096_p2 = pnand %p4094_p0, %p4813_p7 }
 0x11e   : > { %p4103_p9 = por %p4102_p8, %p4101_p6 }
 0x11f   : > { %p4097_p4 = pneg %p4096_p2 }
 0x121   : > { %p4104_p10 = pnand %p4103_p9, %p4097_p4 }
 0x123   : > { %4107 = shalt.err (!%p4104_p10)
}
 0x124   : > { %3611 = dma.hbm_to_vmem [thread:$0]  (!%p4797_p5), %s5663_s17, 16, %s720_s16, [#allocation30]  }
 0x125   : > { %s4603_s4 = smov [#allocation10]   ;;  %s4604_s2 = smov [#allocation13]  }
 0x126   : > { %s560_s0 = sshll.u32 %s4603_s4, 4  ;;  %s581_s18 = sshll.u32 %s4604_s2, 4  ;;  %s561_s0 = int_to_ptr.vmem [resolvable:$true] %s560_s0  ;;  %s582_s18 = int_to_ptr.vmem [resolvable:$true] %s581_s18 }
 0x127   : > { %s5752_s1 = sld [smem:[#allocation65_spill]] }
 0x12d   : > { %s5753_s27 = smov %s5752_s1  ;;  %s4108_s3 = scalar_lea.hbm %s5752_s1, 16 }
 0x12e   : > { %p4109_p1 = scmp.ne.s32.totalorder %s5753_s27, %s4108_s3  ;;  %p4115_p12 = scmp.lt.u32.totalorder %s4108_s3, %s5753_s27 }
 0x130   : > { %p4111_p3 = pnand %p4109_p1, %p4813_p7 }
 0x132   : > { %p4112_p11 = pneg %p4111_p3 }
 0x134   : > { %p4117_p13 = pnand %p4115_p12, %p4112_p11 }
 0x136   : > { %4120 = shalt.err (!%p4117_p13)
}
 0x137   : > { %s4121_s16 = scalar_lea.vmem %s561_s0, 16  ;;  %s4128_s28 = scalar_lea.vmem %s561_s0, 32 }
 0x138   : > { %p4122_p0 = scmp.ne.s32.totalorder %s561_s0, %s4121_s16  ;;  %p4129_p6 = scmp.lt.s32.totalorder %s561_s0, %s561_s0 }
 0x139   : > { %p4130_p8 = scmp.lt.s32.totalorder %s4128_s28, %s4121_s16 }
 0x13a   : > { %p4124_p2 = pnand %p4122_p0, %p4813_p7 }
 0x13b   : > { %p4131_p9 = por %p4130_p8, %p4129_p6 }
 0x13c   : > { %p4125_p4 = pneg %p4124_p2 }
 0x13e   : > { %p4132_p10 = pnand %p4131_p9, %p4125_p4 }
 0x140   : > { %4135 = shalt.err (!%p4132_p10)
}
 0x141   : > { %3572 = dma.hbm_to_vmem [thread:$0]  (!%p4797_p5), %s5753_s27, 16, %s561_s0, [#allocation9]  }
 0x142   : > { %s5754_s6 = sld [smem:[#allocation67_spill]] }
 0x148   : > { %s4136_s1 = scalar_lea.hbm %s5754_s6, 1024 }
 0x149   : > { %p4137_p1 = scmp.ne.s32.totalorder %s5754_s6, %s4136_s1  ;;  %p4143_p12 = scmp.lt.u32.totalorder %s4136_s1, %s5754_s6 }
 0x14b   : > { %p4139_p3 = pnand %p4137_p1, %p4813_p7 }
 0x14d   : > { %p4140_p11 = pneg %p4139_p3 }
 0x14f   : > { %p4145_p13 = pnand %p4143_p12, %p4140_p11 }
 0x151   : > { %4148 = shalt.err (!%p4145_p13)
}
 0x152   : > { %s4149_s21 = scalar_lea.vmem %s582_s18, 1024  ;;  %p4157_p6 = scmp.lt.s32.totalorder %s582_s18, %s582_s18 }
 0x153   : > { %p4150_p0 = scmp.ne.s32.totalorder %s582_s18, %s4149_s21  ;;  %p4158_p8 = scmp.lt.s32.totalorder %s4149_s21, %s4149_s21 }
 0x155   : > { %p4152_p2 = pnand %p4150_p0, %p4813_p7  ;;  %p4159_p9 = por %p4158_p8, %p4157_p6 }
 0x157   : > { %p4153_p4 = pneg %p4152_p2 }
 0x159   : > { %p4160_p10 = pnand %p4159_p9, %p4153_p4 }
 0x15b   : > { %4163 = shalt.err (!%p4160_p10)
}
 0x15c   : > { %s5755_s0 = smov 4   ;;  %s5756_s16 = smov 64  }
 0x15d   : > { %3578 = dma.hbm_to_vmem [thread:$0]  (!%p4797_p5), %s5754_s6, 1024, %s582_s18, [#allocation12], %s5756_s16, %s5756_s16, %s5755_s0  }
 0x15e   : > { %s4605_s2 = smov [#allocation16]   ;;  %s4606_s26 = smov [#allocation19]  }
 0x15f   : > { %s607_s30 = sshll.u32 %s4605_s2, 4  ;;  %s633_s1 = sshll.u32 %s4606_s26, 4  ;;  %s608_s30 = int_to_ptr.vmem [resolvable:$true] %s607_s30  ;;  %s634_s1 = int_to_ptr.vmem [resolvable:$true] %s633_s1 }
 0x160   : > { %s5757_s8 = sld [smem:[#allocation69_spill]] }
 0x166   : > { %s4164_s23 = scalar_lea.hbm %s5757_s8, 1024 }
 0x167   : > { %p4165_p1 = scmp.ne.s32.totalorder %s5757_s8, %s4164_s23  ;;  %p4171_p12 = scmp.lt.u32.totalorder %s4164_s23, %s5757_s8 }
 0x169   : > { %p4167_p3 = pnand %p4165_p1, %p4813_p7 }
 0x16b   : > { %p4168_p11 = pneg %p4167_p3 }
 0x16d   : > { %p4173_p13 = pnand %p4171_p12, %p4168_p11 }
 0x16f   : > { %4176 = shalt.err (!%p4173_p13)
}
 0x170   : > { %s4177_s18 = scalar_lea.vmem %s608_s30, 1024  ;;  %p4185_p6 = scmp.lt.s32.totalorder %s608_s30, %s608_s30 }
 0x171   : > { %p4178_p0 = scmp.ne.s32.totalorder %s608_s30, %s4177_s18  ;;  %p4186_p8 = scmp.lt.s32.totalorder %s4177_s18, %s4177_s18 }
 0x173   : > { %p4180_p2 = pnand %p4178_p0, %p4813_p7  ;;  %p4187_p9 = por %p4186_p8, %p4185_p6 }
 0x175   : > { %p4181_p4 = pneg %p4180_p2 }
 0x177   : > { %p4188_p10 = pnand %p4187_p9, %p4181_p4 }
 0x179   : > { %4191 = shalt.err (!%p4188_p10)
}
 0x17a   : > { %3584 = dma.hbm_to_vmem [thread:$0]  (!%p4797_p5), %s5757_s8, 1024, %s608_s30, [#allocation15], %s5756_s16, %s5756_s16, %s5755_s0  }
 0x17b   : > { %s5758_s10 = sld [smem:[#allocation71_spill]] }
 0x181   : > { %s4192_s3 = scalar_lea.hbm %s5758_s10, 64 }
 0x182   : > { %p4193_p1 = scmp.ne.s32.totalorder %s5758_s10, %s4192_s3  ;;  %p4199_p12 = scmp.lt.u32.totalorder %s4192_s3, %s5758_s10 }
 0x184   : > { %p4195_p3 = pnand %p4193_p1, %p4813_p7 }
 0x186   : > { %p4196_p11 = pneg %p4195_p3 }
 0x188   : > { %p4201_p13 = pnand %p4199_p12, %p4196_p11 }
 0x18a   : > { %4204 = shalt.err (!%p4201_p13)
}
 0x18b   : > { %s4205_s28 = scalar_lea.vmem %s634_s1, 64  ;;  %p4213_p6 = scmp.lt.s32.totalorder %s634_s1, %s634_s1 }
 0x18c   : > { %p4206_p0 = scmp.ne.s32.totalorder %s634_s1, %s4205_s28  ;;  %p4214_p8 = scmp.lt.s32.totalorder %s4205_s28, %s4205_s28 }
 0x18e   : > { %p4208_p2 = pnand %p4206_p0, %p4813_p7  ;;  %p4215_p9 = por %p4214_p8, %p4213_p6 }
 0x190   : > { %p4209_p4 = pneg %p4208_p2 }
 0x192   : > { %p4216_p10 = pnand %p4215_p9, %p4209_p4 }
 0x194   : > { %4219 = shalt.err (!%p4216_p10)
}
 0x195   : > { %s5759_s30 = smov 1   ;;  %s5760_s18 = smov 16  }
 0x196   : > { %3590 = dma.hbm_to_vmem [thread:$0]  (!%p4797_p5), %s5758_s10, 64, %s634_s1, [#allocation18], %s5760_s18, %s5760_s18, %s5759_s30  }
 0x197   : > { %s4607_s2 = smov [#allocation22]   ;;  %s4608_s3 = smov [#allocation25]  }
 0x198   : > { %s659_s26 = sshll.u32 %s4607_s2, 4  ;;  %s684_s22 = sshll.u32 %s4608_s3, 4  ;;  %s660_s26 = int_to_ptr.vmem [resolvable:$true] %s659_s26  ;;  %s685_s22 = int_to_ptr.vmem [resolvable:$true] %s684_s22 }
 0x199   : > { %s5761_s12 = sld [smem:[#allocation73_spill]] }
 0x19f   : > { %s4220_s21 = scalar_lea.hbm %s5761_s12, 256 }
 0x1a0   : > { %p4221_p1 = scmp.ne.s32.totalorder %s5761_s12, %s4220_s21  ;;  %p4227_p12 = scmp.lt.u32.totalorder %s4220_s21, %s5761_s12 }
 0x1a2   : > { %p4223_p3 = pnand %p4221_p1, %p4813_p7 }
 0x1a4   : > { %p4224_p11 = pneg %p4223_p3 }
 0x1a6   : > { %p4229_p13 = pnand %p4227_p12, %p4224_p11 }
 0x1a8   : > { %4232 = shalt.err (!%p4229_p13)
}
 0x1a9   : > { %s4233_s1 = scalar_lea.vmem %s660_s26, 256  ;;  %p4241_p6 = scmp.lt.s32.totalorder %s660_s26, %s660_s26 }
 0x1aa   : > { %p4234_p0 = scmp.ne.s32.totalorder %s660_s26, %s4233_s1  ;;  %p4242_p8 = scmp.lt.s32.totalorder %s4233_s1, %s4233_s1 }
 0x1ac   : > { %p4236_p2 = pnand %p4234_p0, %p4813_p7  ;;  %p4243_p9 = por %p4242_p8, %p4241_p6 }
 0x1ae   : > { %p4237_p4 = pneg %p4236_p2 }
 0x1b0   : > { %p4244_p10 = pnand %p4243_p9, %p4237_p4 }
 0x1b2   : > { %4247 = shalt.err (!%p4244_p10)
}
 0x1b3   : > { %3596 = dma.hbm_to_vmem [thread:$0]  (!%p4797_p5), %s5761_s12, 256, %s660_s26, [#allocation21], %s5756_s16, %s5756_s16, %s5755_s0  }
 0x1b4   : > { %s5762_s14 = sld [smem:[#allocation75_spill]] }
 0x1ba   : > { %s4248_s4 = scalar_lea.hbm %s5762_s14, 16 }
 0x1bb   : > { %p4249_p1 = scmp.ne.s32.totalorder %s5762_s14, %s4248_s4  ;;  %p4255_p12 = scmp.lt.u32.totalorder %s4248_s4, %s5762_s14 }
 0x1bd   : > { %p4251_p3 = pnand %p4249_p1, %p4813_p7 }
 0x1bf   : > { %p4252_p11 = pneg %p4251_p3 }
 0x1c1   : > { %p4257_p13 = pnand %p4255_p12, %p4252_p11 }
 0x1c3   : > { %4260 = shalt.err (!%p4257_p13)
}
 0x1c4   : > { %s4261_s21 = scalar_lea.vmem %s685_s22, 16  ;;  %s4268_s26 = scalar_lea.vmem %s685_s22, 32 }
 0x1c5   : > { %p4262_p0 = scmp.ne.s32.totalorder %s685_s22, %s4261_s21  ;;  %p4269_p6 = scmp.lt.s32.totalorder %s685_s22, %s685_s22 }
 0x1c6   : > { %p4270_p8 = scmp.lt.s32.totalorder %s4268_s26, %s4261_s21 }
 0x1c7   : > { %p4264_p2 = pnand %p4262_p0, %p4813_p7 }
 0x1c8   : > { %p4271_p9 = por %p4270_p8, %p4269_p6 }
 0x1c9   : > { %p4265_p4 = pneg %p4264_p2 }
 0x1cb   : > { %p4272_p10 = pnand %p4271_p9, %p4265_p4 }
 0x1cd   : > { %4275 = shalt.err (!%p4272_p10)
}
 0x1ce   : > { %3602 = dma.hbm_to_vmem [thread:$0]  (!%p4797_p5), %s5762_s14, 16, %s685_s22, [#allocation24]  }
 0x1cf   : > { %s4609_s1 = smov [#allocation28]   ;;  %s4610_s6 = smov [#allocation31]  }
 0x1d0   : > { %s705_s5 = sshll.u32 %s4609_s1, 4  ;;  %s729_s30 = sshll.u32 %s4610_s6, 4  ;;  %s706_s5 = int_to_ptr.vmem [resolvable:$true] %s705_s5  ;;  %s730_s30 = int_to_ptr.vmem [resolvable:$true] %s729_s30 }
 0x1d1   : > { %s5763_s2 = sld [smem:[#allocation76_spill]] }
 0x1d7   : > { %s5764_s7 = smov %s5763_s2  ;;  %s4276_s3 = scalar_lea.hbm %s5763_s2, 256 }
 0x1d8   : > { %p4277_p1 = scmp.ne.s32.totalorder %s5764_s7, %s4276_s3  ;;  %p4283_p12 = scmp.lt.u32.totalorder %s4276_s3, %s5764_s7 }
 0x1da   : > { %p4279_p3 = pnand %p4277_p1, %p4813_p7 }
 0x1dc   : > { %p4280_p11 = pneg %p4279_p3 }
 0x1de   : > { %p4285_p13 = pnand %p4283_p12, %p4280_p11 }
 0x1e0   : > { %4288 = shalt.err (!%p4285_p13)
}
 0x1e1   : > { %s4289_s22 = scalar_lea.vmem %s706_s5, 256  ;;  %p4297_p6 = scmp.lt.s32.totalorder %s706_s5, %s706_s5 }
 0x1e2   : > { %p4290_p0 = scmp.ne.s32.totalorder %s706_s5, %s4289_s22  ;;  %p4298_p8 = scmp.lt.s32.totalorder %s4289_s22, %s4289_s22 }
 0x1e4   : > { %p4292_p2 = pnand %p4290_p0, %p4813_p7  ;;  %p4299_p9 = por %p4298_p8, %p4297_p6 }
 0x1e6   : > { %p4293_p4 = pneg %p4292_p2 }
 0x1e8   : > { %p4300_p10 = pnand %p4299_p9, %p4293_p4 }
 0x1ea   : > { %4303 = shalt.err (!%p4300_p10)
}
 0x1eb   : > { %3608 = dma.hbm_to_vmem [thread:$0]  (!%p4797_p5), %s5764_s7, 256, %s706_s5, [#allocation27], %s5756_s16, %s5756_s16, %s5755_s0  }
 0x1ec   : > { %s5765_s18 = sld [smem:[#allocation77_spill]] }
 0x1f2   : > { %s4304_s4 = scalar_lea.hbm %s5765_s18, 1024 }
 0x1f3   : > { %p4305_p1 = scmp.ne.s32.totalorder %s5765_s18, %s4304_s4  ;;  %p4311_p12 = scmp.lt.u32.totalorder %s4304_s4, %s5765_s18 }
 0x1f5   : > { %p4307_p3 = pnand %p4305_p1, %p4813_p7 }
 0x1f7   : > { %p4308_p11 = pneg %p4307_p3 }
 0x1f9   : > { %p4313_p13 = pnand %p4311_p12, %p4308_p11 }
 0x1fb   : > { %4316 = shalt.err (!%p4313_p13)
}
 0x1fc   : > { %s4317_s21 = scalar_lea.vmem %s730_s30, 1024  ;;  %p4325_p6 = scmp.lt.s32.totalorder %s730_s30, %s730_s30 }
 0x1fd   : > { %p4318_p0 = scmp.ne.s32.totalorder %s730_s30, %s4317_s21  ;;  %p4326_p8 = scmp.lt.s32.totalorder %s4317_s21, %s4317_s21 }
 0x1ff   : > { %p4320_p2 = pnand %p4318_p0, %p4813_p7  ;;  %p4327_p9 = por %p4326_p8, %p4325_p6 }
 0x201   : > { %p4321_p4 = pneg %p4320_p2 }
 0x203   : > { %p4328_p10 = pnand %p4327_p9, %p4321_p4 }
 0x205   : > { %4331 = shalt.err (!%p4328_p10)
}
 0x206   : > { %3614 = dma.hbm_to_vmem [thread:$0]  (!%p4797_p5), %s5765_s18, 1024, %s730_s30, [#allocation30], %s5756_s16, %s5756_s16, %s5755_s0  }
 0x207   : > { %s4611_s22 = smov [#allocation32]   ;;  %s5766_s6 = sld [smem:[#allocation78_spill]] }
 0x208   : > { %s743_s28 = sshll.u32 %s4611_s22, 4  ;;  %s744_s28 = int_to_ptr.vmem [resolvable:$true] %s743_s28 }
 0x20d   : > { %s4332_s4 = scalar_lea.hbm %s5766_s6, 16 }
 0x20e   : > { %p4333_p1 = scmp.ne.s32.totalorder %s5766_s6, %s4332_s4  ;;  %p4339_p12 = scmp.lt.u32.totalorder %s4332_s4, %s5766_s6 }
 0x210   : > { %p4335_p3 = pnand %p4333_p1, %p4813_p7 }
 0x212   : > { %p4336_p11 = pneg %p4335_p3 }
 0x214   : > { %p4341_p13 = pnand %p4339_p12, %p4336_p11 }
 0x216   : > { %4344 = shalt.err (!%p4341_p13)
}
 0x217   : > { %s4345_s0 = scalar_lea.vmem %s744_s28, 16  ;;  %s4352_s16 = scalar_lea.vmem %s744_s28, 32 }
 0x218   : > { %p4346_p0 = scmp.ne.s32.totalorder %s744_s28, %s4345_s0  ;;  %p4353_p6 = scmp.lt.s32.totalorder %s744_s28, %s744_s28 }
 0x219   : > { %p4354_p8 = scmp.lt.s32.totalorder %s4352_s16, %s4345_s0 }
 0x21a   : > { %p4348_p2 = pnand %p4346_p0, %p4813_p7 }
 0x21b   : > { %p4355_p9 = por %p4354_p8, %p4353_p6 }
 0x21c   : > { %p4349_p4 = pneg %p4348_p2 }
 0x21e   : > { %p4356_p10 = pnand %p4355_p9, %p4349_p4 }
 0x220   : > { %4359 = shalt.err (!%p4356_p10)
}
 0x221   : > { %s5767_s5 = sld [smem:[#allocation58_spill]]  ;;  %s5768_s26 = sld [smem:[#allocation56_spill]] }
 0x222   : > { %s5769_s22 = sld [smem:[#allocation57_spill]]  ;;  %s5770_s25 = sld [smem:[#allocation53_spill]] }
 0x223   : > { %s5771_s1 = sld [smem:[#allocation52_spill]]  ;;  %s5772_s29 = sld [smem:[#allocation51_spill]] }
 0x224   : > { %s5773_s4 = sld [smem:[#allocation59_spill]]  ;;  %s5774_s2 = sld [smem:[#allocation50_spill]] }
 0x225   : > { %3617 = dma.hbm_to_vmem [thread:$0]  (!%p4797_p5), %s5766_s6, 16, %s744_s28, [#allocation33]  }
 0x226   : > { %s5775_s23 = sld [smem:[#allocation49_spill]]  ;;  %s5776_s28 = sld [smem:[#allocation48_spill]] }
 0x227   : > { %s3080_s3 = sadd.s32 4294967294, %s5767_s5   ;;  %s57_s20 = sadd.s32 1, %s5768_s26 }
 0x228   : > { %p58_p7 = scmp.ge.s32.totalorder %s57_s20, 2  ;;  %s60_s24 = sadd.s32 1, %s5769_s22 }
 0x229   : > { %s67_s0 = sadd.s32 1, %s5770_s25  ;;  %p74_p1 = scmp.ne.s32.totalorder %s5770_s25, %s5771_s1 }
 0x22a   : > { %s5835_s20 = smov (%p58_p7, %s57_s20), 0  ;;  %s5837_s24 = smov (!%p58_p7, %s60_s24), %s5769_s22 }
 0x22b   : > { %p75_p3 = scmp.eq.s32.totalorder %s5767_s5, 0  ;;  %p80_p11 = scmp.ne.s32.totalorder %s5771_s1, %s5772_s29 }
 0x22c   : > { %p62_p5 = scmp.ge.s32.totalorder %s5837_s24, 2  ;;  %s495_s16 = ssub.s32 %s5768_s26, %s5835_s20 }
 0x22d   : > { %p5190_p12 = por %p75_p3, %p74_p1  ;;  %p5778_p13 = scmp.eq.s32.totalorder %s5773_s4, 0 }
 0x22e   : > { %s5839_s24 = smov (%p62_p5, %s5837_s24), 0  ;;  %s499_s6 = sadd.s32 1, %s5774_s2 }
 0x22f   : > { %p5196_p0 = por %p5778_p13, %p80_p11  ;;  %p509_p2 = scmp.ne.s32.totalorder %s5774_s2, %s5775_s23 }
 0x230   : > { %s64_s1 = ssub.s32 %s5769_s22, %s5839_s24  ;;  %p510_p4 = scmp.eq.s32.totalorder %s5773_s4, 3 }
 0x231   : > { %s5779_s21 = scalar_select %p5196_p0, 1, 0 }
 0x232   : > { %p65_p6 = scmp.eq.s32.totalorder %s64_s1, 0  ;;  %s496_s26 = sor.u32 %s495_s16, %s64_s1 }
 0x233   : > { %p497_p8 = scmp.eq.s32.totalorder %s496_s26, 0  ;;  %p5208_p9 = por %p510_p4, %p509_p2 }
 0x234   : > { %s5213_s7 = scalar_select %p65_p6, %s5770_s25, %s67_s0  }
 0x235   : > { %s5780_s29 = scalar_select %p5208_p9, 1, 0 }
 0x236   : > { %s5841_s2 = smov (!%p497_p8, %s5774_s2), %s499_s6  ;;  %p515_p10 = scmp.ne.s32.totalorder %s5775_s23, %s5776_s28 }
 0x237   : > { %p516_p7 = scmp.eq.s32.totalorder %s3080_s3, 3  ;;  %p3647_p1 = scmp.lt.s32.totalorder %s5767_s5, 4 }
 0x238   : > { %s5222_s8 = sand.u32 1, %s5770_s25   ;;  %s3216_s1 = sshll.u32 %s5769_s22, 8 }
 0x239   : > { %p5224_p3 = por %p516_p7, %p515_p10  ;;  %s3101_s16 = sshll.u32 %s5222_s8, 4 }
 0x23a   : > { %s5782_s10 = sld [smem:[#allocation61_spill]]  ;;  %s758_s6 = scalar_lea.vmem [#allocation2], %s3101_s16 }
 0x23b   : > { %s5781_s4 = scalar_select %p5224_p3, 1, 0 }
 0x23c   : > { %s765_s25 = sshll.u32 %s758_s6, 4  ;;  %p5237_p11 = pnand %p3647_p1, %p5190_p12  ;;  %s5241_s25 = int_to_ptr.vmem [resolvable:$true] %s765_s25 }
 0x23d   : > { %s755_s28 = scalar_lea.sflag [#allocation3], %s5222_s8 }
 0x23e   : > { %p4362_p13 = pneg %p5237_p11 }
 0x240   : > { %s5233_s0 = scalar_lea.hbm %s5782_s10, %s3216_s1  ;;  %s4365_s1 = scalar_lea.hbm %s5782_s10, 512 }
 0x241   : > { %s4360_s9 = scalar_lea.hbm %s5233_s0, 256  ;;  %p4366_p12 = scmp.lt.u32.totalorder %s5233_s0, %s5782_s10 }
 0x242   : > { %p4361_p5 = scmp.ne.s32.totalorder %s5233_s0, %s4360_s9  ;;  %p4367_p6 = scmp.lt.u32.totalorder %s4365_s1, %s4360_s9 }
 0x243   : > { %p4369_p10 = scmp.lt.u32.totalorder %s4360_s9, %s5233_s0 }
 0x244   : > { %p4363_p2 = pnand %p4362_p13, %p4361_p5  ;;  %p4368_p8 = por %p4367_p6, %p4366_p12 }
 0x246   : > { %p4364_p4 = pneg %p4363_p2  ;;  %p4370_p7 = por %p4369_p10, %p4368_p8 }
 0x248   : > { %p4371_p1 = pnand %p4370_p7, %p4364_p4 }
 0x24a   : > { %4374 = shalt.err (!%p4371_p1)
}
 0x24b   : > { %s4375_s23 = scalar_lea.vmem %s5241_s25, 256  ;;  %s4612_s16 = smov [#allocation2]  }
 0x24c   : > { %p4376_p5 = scmp.ne.s32.totalorder %s5241_s25, %s4375_s23  ;;  %s4380_s30 = sshll.u32 %s4612_s16, 4  ;;  %s4381_s30 = int_to_ptr.vmem [resolvable:$false] %s4380_s30 }
 0x24d   : > { %s4382_s26 = scalar_lea.vmem %s4381_s30, 512  ;;  %p4383_p9 = scmp.lt.s32.totalorder %s5241_s25, %s4381_s30 }
 0x24e   : > { %p4378_p2 = pnand %p4376_p5, %p4362_p13  ;;  %p4384_p12 = scmp.lt.s32.totalorder %s4382_s26, %s4375_s23 }
 0x250   : > { %p4379_p3 = pneg %p4378_p2  ;;  %p4385_p6 = por %p4384_p12, %p4383_p9 }
 0x252   : > { %p4386_p8 = pnand %p4385_p6, %p4379_p3 }
 0x254   : > { %4389 = shalt.err (!%p4386_p8)
}
 0x255   : > { %s5784_s9 = smov 8   ;;  %s5785_s1 = smov 128  }
 0x256   : > { %3621 = dma.hbm_to_vmem [thread:$0]  (!%p5237_p11), %s5233_s0, 256, %s5241_s25, %s755_s28, %s5785_s1, %s5785_s1, %s5784_s9  }
 0x257   : > { %s3104_s6 = sshll.u32 %s5769_s22, 4  ;;  %s5786_s30 = sld [smem:[#allocation62_spill]] }
 0x258   : > { %s778_s10 = scalar_lea.vmem [#allocation5], %s5222_s8  ;;  %s5787_s12 = sand.u32 1, %s5767_s5  }
 0x259   : > { %s785_s11 = sshll.u32 %s778_s10, 4  ;;  %s776_s13 = scalar_lea.sflag [#allocation6], %s5787_s12  ;;  %s786_s11 = int_to_ptr.vmem [resolvable:$true] %s785_s11 }
 0x25d   : > { %s5279_s26 = scalar_lea.hbm %s5786_s30, %s3104_s6  ;;  %s4395_s25 = scalar_lea.hbm %s5786_s30, 32 }
 0x25e   : > { %s4390_s14 = scalar_lea.hbm %s5279_s26, 16  ;;  %p4396_p10 = scmp.lt.u32.totalorder %s5279_s26, %s5786_s30 }
 0x25f   : > { %p4391_p9 = scmp.ne.s32.totalorder %s5279_s26, %s4390_s14  ;;  %p4397_p7 = scmp.lt.u32.totalorder %s4395_s25, %s4390_s14 }
 0x260   : > { %p4399_p5 = scmp.lt.u32.totalorder %s4390_s14, %s5279_s26 }
 0x261   : > { %p4393_p3 = pnand %p4391_p9, %p4362_p13  ;;  %p4398_p1 = por %p4397_p7, %p4396_p10 }
 0x263   : > { %p4394_p4 = pneg %p4393_p3  ;;  %p4400_p2 = por %p4399_p5, %p4398_p1 }
 0x265   : > { %p4401_p12 = pnand %p4400_p2, %p4394_p4 }
 0x267   : > { %4404 = shalt.err (!%p4401_p12)
}
 0x268   : > { %s4405_s8 = scalar_lea.vmem %s786_s11, 16  ;;  %s4613_s10 = smov [#allocation5]  }
 0x269   : > { %p4406_p6 = scmp.ne.s32.totalorder %s786_s11, %s4405_s8  ;;  %s4410_s12 = sshll.u32 %s4613_s10, 4  ;;  %s4411_s12 = int_to_ptr.vmem [resolvable:$false] %s4410_s12 }
 0x26a   : > { %s4412_s5 = scalar_lea.vmem %s4411_s12, 32  ;;  %p4413_p3 = scmp.lt.s32.totalorder %s786_s11, %s4411_s12 }
 0x26b   : > { %p4408_p8 = pnand %p4406_p6, %p4362_p13  ;;  %p4414_p0 = scmp.lt.s32.totalorder %s4412_s5, %s4405_s8 }
 0x26d   : > { %p4409_p9 = pneg %p4408_p8  ;;  %p4415_p7 = por %p4414_p0, %p4413_p3 }
 0x26f   : > { %p4416_p10 = pnand %p4415_p7, %p4409_p9 }
 0x271   : > { %4419 = shalt.err (!%p4416_p10)
}
 0x272   : > { %3624 = dma.hbm_to_vmem [thread:$0]  (!%p5237_p11), %s5279_s26, 16, %s786_s11, %s776_s13  }
 0x273   : > { %s5788_s14 = sld [smem:[#allocation60_spill]] }
 0x279   : > { %p5789_p4 = scmp.ne.s32.totalorder %s5788_s14, 0 }
 0x27a   : > { %s5790_s1 = sld [smem:[#allocation52_spill]] (!%p5789_p4)  ;;  %p5791_p0 = scmp.ne.s32.totalorder (!%p5789_p4), %s5779_s21, 0 }
 0x27b   : > { %794 = sbr.rel (%p5789_p4) target bundleno = 6214 (0x1846), region = 100 }
 0x280   : > { %s5306_s6 = sand.u32 (!%p5789_p4), 1, %s5790_s1  }
 0x281   : > { %s3106_s16 = sshll.u32 (!%p5789_p4), %s5306_s6, 4  ;;  %s797_s23 = scalar_lea.sflag (!%p5789_p4), [#allocation3], %s5306_s6 }
 0x282   : > { %s5310_s22 = scalar_lea.vmem [#allocation2], %s3106_s16 }
 0x283   : > { %4493 = dma.done.wait (%p5791_p0), %s797_s23, 256  }
 0x284   : > { %4495 = vsyncadd (%p5791_p0), %s797_s23, 4294967040  ;;  %s5792_s3 = sld [smem:[#allocation59_spill]]  ;;  %s808_s26 = scalar_lea.vmem [#allocation5], %s5306_s6 }
 0x28a   : > { %s805_s11 = sand.u32 1, %s5792_s3  }
 0x28b   : > { %s806_s13 = scalar_lea.sflag [#allocation6], %s805_s11 }
 0x28c   : > { %4497 = dma.done.wait (%p5791_p0), %s806_s13, 16  }
 0x28d   : > { %4499 = vsyncadd (%p5791_p0), %s806_s13, 4294967280  ;;  %p5793_p11 = scmp.eq.s32.totalorder %s5792_s3, 0 }
 0x28f   : > { %4501 = dma.done.wait (%p5793_p11), [#allocation6], 512   ;;  %p5794_p13 = pmov %p5793_p11 }
 0x290   : > { %p5795_p1 = pmov %p5793_p11 }
 0x291   : > { %4503 = vsyncadd (%p5794_p13), [#allocation6], 4294966784 }
 0x292   : > { %4505 = dma.done.wait (%p5795_p1), [#allocation9], 48   ;;  %p5796_p5 = pmov %p5795_p1 }
 0x293   : > { %p5797_p2 = pmov %p5795_p1 }
 0x294   : > { %4507 = vsyncadd (%p5796_p5), [#allocation9], 4294967248 }
 0x295   : > { %4509 = dma.done.wait (%p5797_p2), [#allocation12], 1040   ;;  %p5798_p12 = pmov %p5795_p1 }
 0x296   : > { %p5799_p6 = pmov %p5795_p1 }
 0x297   : > { %4511 = vsyncadd (%p5798_p12), [#allocation12], 4294966256 }
 0x298   : > { %4513 = dma.done.wait (%p5799_p6), [#allocation15], 2048   ;;  %p5800_p8 = pmov %p5795_p1 }
 0x299   : > { %p5801_p9 = pmov %p5795_p1 }
 0x29a   : > { %4515 = vsyncadd (%p5800_p8), [#allocation15], 4294965248 }
 0x29b   : > { %4517 = dma.done.wait (%p5801_p9), [#allocation18], 128   ;;  %p5802_p3 = pmov %p5795_p1 }
 0x29c   : > { %p5803_p7 = pmov %p5795_p1 }
 0x29d   : > { %4519 = vsyncadd (%p5802_p3), [#allocation18], 4294967168 }
 0x29e   : > { %4521 = dma.done.wait (%p5803_p7), [#allocation21], 320   ;;  %p5804_p10 = pmov %p5795_p1 }
 0x29f   : > { %p5805_p4 = pmov %p5795_p1 }
 0x2a0   : > { %4523 = vsyncadd (%p5804_p10), [#allocation21], 4294966976 }
 0x2a1   : > { %4525 = dma.done.wait (%p5805_p4), [#allocation24], 32   ;;  %p5806_p0 = pmov %p5795_p1 }
 0x2a3   : > { %4527 = vsyncadd (%p5806_p0), [#allocation24], 4294967264  ;;  %p5807_p11 = pmov %p5806_p0 }
 0x2a4   : > { %p5808_p13 = pmov %p5806_p0 }
 0x2a5   : > { %4529 = dma.done.wait (%p5807_p11), [#allocation27], 272  }
 0x2a6   : > { %4531 = vsyncadd (%p5808_p13), [#allocation27], 4294967024  ;;  %p5809_p1 = pmov %p5806_p0 }
 0x2a7   : > { %p5810_p5 = pmov %p5806_p0 }
 0x2a8   : > { %4533 = dma.done.wait (%p5809_p1), [#allocation30], 1040  }
 0x2a9   : > { %4535 = vsyncadd (%p5810_p5), [#allocation30], 4294966256  ;;  %p5811_p2 = pmov %p5806_p0 }
 0x2aa   : > { %p5812_p12 = pmov %p5806_p0 }
 0x2ab   : > { %4537 = dma.done.wait (%p5811_p2), [#allocation33], 16  }
 0x2ac   : > { %4539 = vsyncadd (%p5812_p12), [#allocation33], 4294967280  ;;  %s5813_s21 = sld [smem:[#allocation54_spill]]  ;;  %v4614_v0 = vmov 0   ;;  %vm990_vm0 = vcmask 261120   ;;  %v944_v2 = vld [vmem:[%s5310_s22 + $0x8] sm:$0xff]  ;;  %v980_v35 = vlaneseq }
 0x2ad   : > { %1026 = vmatprep.mubr.bf16.mxu1 %v4614_v0  ;;  %v943_v3 = vld [vmem:[%s5310_s22] sm:$0xff]  ;;  %v1042_v5 = vsel %vm990_vm0, %v944_v2, 0.0  ;;  %v3791_v33 = vld [vmem:[#allocation13] sm:$0xff]   ;;  %v4615_v34 = vmov 0.0   ;;  %vm4616_vm1 = vmmov 0   ;;  %s4617_s28 = smov 96  }
 0x2ae   : > { %1043 = vadd.xlane.f32.xlu1 %v1042_v5  ;;  %v1039_v6 = vsel %vm990_vm0, %v943_v3, 0.0  ;;  %v3785_v7 = vld [vmem:[#allocation7 + $0x4] ss:$8 sps:$4 sm:$0xff]   ;;  %v3787_v8 = vld [vmem:[#allocation7] ss:$8 sps:$4 sm:$0xff]   ;;  %3313 = vmatprep.subr.bf16.mxu0 %v4615_v34  ;;  %v5381_v36 = vshrl.u32 %v980_v35, 7 }
 0x2af   : > { %v3788_v9 = vld [vmem:[#allocation7 + $0x14] ss:$8 sps:$4 sm:$0xff]   ;;  %v3790_v10 = vld [vmem:[#allocation7 + $0x10] ss:$8 sps:$4 sm:$0xff]   ;;  %994 = vmatprep.subr.bf16.mxu1 %v3785_v7  ;;  %v5386_v38 = vld [vmem:[#allocation8] sm:$0x3]  ;;  %3315 = vmatprep.mubr.msk.bf16.mxu0 %vm4616_vm1, %v4615_v34 }
 0x2b0   : > { %v945_v11 = vld [vmem:[%s808_s26] sm:$0x1]  ;;  %995 = vmatpush1.bf16.msra.mxu1 %v3787_v8  ;;  %v5384_v37 = vsub.s32 0, %v5381_v36  ;;  %v3792_v39 = vld [vmem:[#allocation13 + $0x8] sm:$0xff]   ;;  %v3133_v61 = vld [vmem:[#allocation10] ss:$0 sm:$0xff] }
 0x2b1   : > { %v3127_v12 = vmul.f32 -1.442695, %v945_v11  ;;  %996 = vmatprep.subr.bf16.mxu1 %v3788_v9  ;;  %vm1319_vm2 = vcmask 64512   ;;  %vm1366_vm3 = vcmask 130048   ;;  %vm1733_vm4 = vcmask 1043456   ;;  %s4618_s9 = smov 64  }
 0x2b2   : > { %s3126_s0 = sshll.u32 %s5813_s21, 3  ;;  %v983_v40 = vrot.slane %v5386_v38, %v5384_v37  ;;  %s4619_s8 = smov 32  }
 0x2b3   : > { %s5364_s25 = scalar_lea.vmem %s5310_s22, %s3126_s0 [#allocation2]  ;;  %3825 = vpow2.f32 %v3127_v12  ;;  %s5814_s10 = sld [smem:[#allocation49_spill]] }
 0x2b4   : > { %v1100_v1 = vld [vmem:[%s5364_s25] sm:$0xff]  ;;  %997 = vmatpush1.bf16.msra.mxu1 %v3790_v10  ;;  %s5815_s12 = sld [smem:[#allocation55_spill]]  ;;  %s5816_s13 = sld [smem:[#allocation79_spill]] }
 0x2b5   : > { %v1101_v4 = vsel %vm990_vm0, %v1100_v1, 0.0  ;;  %3289 = vmatprep.subr.bf16.mxu1 %v4615_v34  ;;  %p5817_p8 = scmp.ne.s32.totalorder %s5780_s29, 0 }
 0x2b6   : > { %1102 = vadd.xlane.f32.xlu0 %v1101_v4 }
 0x2b9   : > { %s938_s5 = sand.u32 1, %s5814_s10  }
 0x2ba   : > { %1040 = vadd.xlane.f32.xlu0 %v1039_v6  ;;  %s3125_s14 = sshll.u32 %s938_s5, 3  ;;  %s3212_s1 = sshll.u32 %s5815_s12, 1 }
 0x2bb   : > { %s2799_s6 = sadd.s32 %s5813_s21, %s3212_s1  ;;  %s940_s23 = scalar_lea.vmem [#allocation34], %s3125_s14 }
 0x2bc   : > { %s3213_s16 = sshll.u32 %s2799_s6, 7  ;;  %s2803_s22 = sshll.u32 %s940_s23, 4  ;;  %s5585_s22 = int_to_ptr.vmem [resolvable:$true] %s2803_s22 }
 0x2bd   : > { %v3826_v13 = vpop.eup %3825  ;;  %s5583_s26 = scalar_lea.hbm %s5816_s13, %s3213_s16  ;;  %s2788_s0 = scalar_lea.sflag [#allocation4], %s938_s5 }
 0x2be   : > { %v949_v14 = vadd.f32 1.0, %v3826_v13  ;;  %s4420_s21 = scalar_lea.vmem %s5585_s22, 128 }
 0x2bf   : > { %p4421_p6 = scmp.ne.s32.totalorder %s5585_s22, %s4420_s21 }
 0x2c0   : > { %3827 = vrcp.f32 %v949_v14 }
 0x2c1   : > { %p4422_p9 = pnand %p4421_p6, %p5817_p8 }
 0x2c3   : > { %p4423_p3 = pneg %p4422_p9 }
 0x2ca   : > { %v3828_v15 = vpop.eup %3827 }
 0x2cb   : > { %v952_v16 = vmul.f32 %v3828_v15, %v945_v11  ;;  %v3793_v11 = vld [vmem:[#allocation14] sm:$0xff]   ;;  %v3794_v15 = vld [vmem:[#allocation14 + $0x8] sm:$0xff]  }
 0x2cd   : > { %v953_v17 = vpack.c.bf16 %v952_v16, %v952_v16 }
 0x2cf   : > { %3132 = vmatmul.mubr.msk.bf16.vlgmr.msra.gmra.mrb[0].mxu1 %vm990_vm0, %v953_v17 }
 0x2d0   : > { %3290 = vmatpush3.bf16.msra.mxu1 %v3791_v33  ;;  %3293 = vmatprep.mubr.msk.bf16.mxu1 %vm4616_vm1, %v4615_v34 }
 0x2d1   : > { %3291 = vmatprep.subr.bf16.mxu1 %v4615_v34 }
 0x2d4   : > { %3292 = vmatpush3.bf16.msra.mxu1 %v3792_v39 }
 0x2d5   : > { %3297 = vmatprep.subr.bf16.mxu1 %v4615_v34 }
 0x33b   : > { %v1044_v19 = vpop.xlane.xlu1 %1043 }
 0x33c   : > { %v1047_v21 = vmul.f32 0.03125, %v1044_v19 }
 0x33e   : > { %v1049_v23 = vsub.f32 %v944_v2, %v1047_v21 }
 0x340   : > { %v1051_v27 = vmul.f32 %v1049_v23, %v1049_v23 }
 0x342   : > { %v1055_v30 = vsel %vm990_vm0, %v1051_v27, 0.0 }
 0x343   : > { %v1103_v18 = vpop.xlane.xlu0 %1102 }
 0x344   : > { %v1104_v20 = vmul.f32 0.03125, %v1103_v18  ;;  %v3795_v18 = vld [vmem:[#allocation16] sm:$0xff]  }
 0x346   : > { %v1105_v22 = vsub.f32 %v1100_v1, %v1104_v20  ;;  %v3134_v1 = vld [vmem:[#allocation11] ss:$0 sm:$0xff]  ;;  %v3796_v20 = vld [vmem:[#allocation16 + $0x8] sm:$0xff]  }
 0x347   : > { %v1041_v24 = vpop.xlane.xlu0 %1040 }
 0x348   : > { %v1046_v25 = vmul.f32 0.03125, %v1041_v24  ;;  %v1106_v26 = vmul.f32 %v1105_v22, %v1105_v22 }
 0x34a   : > { %v1048_v28 = vsub.f32 %v943_v3, %v1046_v25  ;;  %v1107_v29 = vsel %vm990_vm0, %v1106_v26, 0.0  ;;  %v3139_v25 = vld [vmem:[#allocation19] ss:$0 sm:$0xff] }
 0x34b   : > { %1108 = vadd.xlane.f32.xlu1 %v1107_v29 }
 0x34c   : > { %v1050_v31 = vmul.f32 %v1048_v28, %v1048_v28 }
 0x34e   : > { %v1052_v32 = vsel %vm990_vm0, %v1050_v31, 0.0 }
 0x34f   : > { %1056 = vadd.xlane.f32.xlu1 %v1055_v30  ;;  %1053 = vadd.xlane.f32.xlu0 %v1052_v32 }
 0x3a2   : > { %v1028_v41 = vpop.f32.mrb[0].mxu1 }
 0x3a3   : > { %v1029_v42 = vadd.f32 %v1028_v41, %v983_v40  ;;  %v5395_v43 = vpop.f32.mrb[1].mxu1  ;;  %v3143_v40 = vld [vmem:[#allocation20] ss:$0 sm:$0xff] }
 0x3a4   : > { %v1032_v44 = vpop.f32.mrb[2].mxu1 }
 0x3a5   : > { %v1035_v45 = vadd.f32 1.0, %v1029_v42  ;;  %v1033_v46 = vpop.f32.mrb[3].mxu1  ;;  %v5400_v6 = vrot.slane %v1029_v42, %v5384_v37 }
 0x3a7   : > { %v1085_v47 = vrot.slane %v1035_v45, %v5384_v37 }
 0x3a9   : > { %1087 = vrot.lane.b32.xlu0 %v1085_v47, %s4617_s28 }
 0x3d8   : > { %v1109_v48 = vpop.xlane.xlu1 %1108 }
 0x3d9   : > { %v1110_v49 = vmul.f32 0.03125, %v1109_v48 }
 0x3db   : > { %v1111_v53 = vadd.f32 1e-05, %v1110_v49  ;;  %v3797_v49 = vld [vmem:[#allocation13 + $0x10] sm:$0xff]  }
 0x3dc   : > { %v1057_v50 = vpop.xlane.xlu1 %1056  ;;  %v1054_v51 = vpop.xlane.xlu0 %1053 }
 0x3dd   : > { %v1059_v52 = vmul.f32 0.03125, %v1057_v50  ;;  %v1058_v54 = vmul.f32 0.03125, %v1054_v51  ;;  %3829 = vrsqrt.f32 %v1111_v53  ;;  %v3799_v53 = vld [vmem:[#allocation16 + $0x10] sm:$0xff]  }
 0x3df   : > { %v1061_v55 = vadd.f32 1e-05, %v1059_v52  ;;  %v1060_v56 = vadd.f32 1e-05, %v1058_v54  ;;  %v3798_v52 = vld [vmem:[#allocation13 + $0x18] sm:$0xff]  }
 0x3e0   : > { %v3800_v54 = vld [vmem:[#allocation16 + $0x18] sm:$0xff]  }
 0x3e1   : > { %3831 = vrsqrt.f32 %v1061_v55 }
 0x3e2   : > { %3833 = vrsqrt.f32 %v1060_v56 }
 0x3e7   : > { %v3830_v57 = vpop.eup %3829 }
 0x3e8   : > { %v1113_v59 = vmul.f32 %v3830_v57, %v1105_v22 }
 0x3ea   : > { %v1114_v0 = vmul.f32 %v3133_v61, %v1113_v59 }
 0x3eb   : > { %v3832_v58 = vpop.eup %3831 }
 0x3ec   : > { %v3834_v60 = vpop.eup %3833  ;;  %v1065_v63 = vmul.f32 %v3832_v58, %v1049_v23  ;;  %v1115_v4 = vadd.f32 %v3134_v1, %v1114_v0  ;;  %v3157_v0 = vld [vmem:[#allocation20 + $0x1] ss:$0 sm:$0xff] }
 0x3ed   : > { %v1064_v62 = vmul.f32 %v3834_v60, %v1048_v28  ;;  %v3135_v28 = vld [vmem:[#allocation17] ss:$0 sm:$0xff] }
 0x3ee   : > { %v1073_v3 = vmul.f32 %v3133_v61, %v1065_v63 }
 0x3ef   : > { %v1072_v2 = vmul.f32 %v3133_v61, %v1064_v62 }
 0x3f0   : > { %v1081_v9 = vadd.f32 %v3134_v1, %v1073_v3 }
 0x3f1   : > { %v1080_v8 = vadd.f32 %v3134_v1, %v1072_v2 }
 0x41b   : > { %v1088_v5 = vpop.permute.xlu0 %1087 }
 0x41c   : > { %v1116_v7 = vmul.f32 %v1115_v4, %v1088_v5  ;;  %v1090_v12 = vmul.f32 %v1088_v5, %v1080_v8  ;;  %v1091_v13 = vmul.f32 %v1088_v5, %v1081_v9 }
 0x41e   : > { %v1117_v10 = vadd.f32 %v1116_v7, %v5400_v6  ;;  %v1096_v16 = vadd.f32 %v5400_v6, %v1090_v12  ;;  %v1097_v17 = vadd.f32 %v5400_v6, %v1091_v13 }
 0x420   : > { %v5403_v14 = vpack.c.bf16 %v1117_v10, %v1117_v10  ;;  %v5412_v19 = vpack.c.bf16 %v1097_v17, %v1096_v16 }
 0x422   : > { %3294 = vmatmul.mubr.msk.bf16.vlgmr.msra.gmra.mrb[4].mxu1 %vm990_vm0, %v5403_v14 }
 0x423   : > { %3298 = vmatpush3.bf16.msra.mxu1 %v3793_v11  ;;  %3301 = vmatprep.mubr.msk.bf16.mxu1 %vm4616_vm1, %v4615_v34 }
 0x424   : > { %3299 = vmatprep.subr.bf16.mxu1 %v4615_v34 }
 0x427   : > { %3300 = vmatpush3.bf16.msra.mxu1 %v3794_v15 }
 0x428   : > { %3305 = vmatprep.subr.bf16.mxu1 %v4615_v34 }
 0x42a   : > { %3302 = vmatmul.mubr.msk.bf16.vlgmr.msra.gmra.mrb[8].mxu1 %vm990_vm0, %v5412_v19 }
 0x42b   : > { %3306 = vmatpush3.bf16.msra.mxu1 %v3795_v18  ;;  %3309 = vmatprep.mubr.msk.bf16.mxu1 %vm4616_vm1, %v4615_v34  ;;  %v3801_v18 = vld [vmem:[#allocation14 + $0x10] sm:$0xff]  }
 0x42c   : > { %3307 = vmatprep.subr.bf16.mxu1 %v4615_v34 }
 0x42f   : > { %3308 = vmatpush3.bf16.msra.mxu1 %v3796_v20 }
 0x430   : > { %3319 = vmatprep.subr.bf16.mxu1 %v4615_v34 }
 0x432   : > { %3310 = vmatmul.mubr.msk.bf16.vlgmr.msra.gmra.mrb[12].mxu1 %vm990_vm0, %v5412_v19 }
 0x433   : > { %3321 = vmatprep.mubr.msk.bf16.mxu1 %vm4616_vm1, %v4615_v34 }
 0x4f5   : > { %v1179_v21 = vpop.f32.mrb[4].mxu1 }
 0x4f6   : > { %v3295_v22 = vpop.f32.mrb[5].mxu1  ;;  %v1180_v33 = vadd.f32 %v3135_v28, %v1179_v21  ;;  %v3802_v21 = vld [vmem:[#allocation14 + $0x18] sm:$0xff]  }
 0x4f7   : > { %v1182_v23 = vpop.f32.mrb[6].mxu1 }
 0x4f8   : > { %v3296_v24 = vpop.f32.mrb[7].mxu1  ;;  %v1316_v42 = vmul.f32 0.35355338, %v1180_v33 }
 0x4fa   : > { %v1317_v50 = vpack.c.bf16 %v1316_v42, %v1316_v42 }
 0x4fd   : > { %v1245_v26 = vpop.f32.mrb[8].mxu1 }
 0x4fe   : > { %v3303_v27 = vpop.f32.mrb[9].mxu1  ;;  %v1246_v30 = vadd.f32 %v3139_v25, %v1245_v26  ;;  %v3153_v26 = vld [vmem:[#allocation19 + $0x1] ss:$0 sm:$0xff] }
 0x4ff   : > { %v1248_v29 = vpop.f32.mrb[10].mxu1 }
 0x500   : > { %v1249_v31 = vadd.f32 %v3139_v25, %v1248_v29  ;;  %v3304_v32 = vpop.f32.mrb[11].mxu1  ;;  %v3149_v29 = vld [vmem:[#allocation17 + $0x1] ss:$0 sm:$0xff] }
 0x502   : > { %v1318_v35 = vpack.c.bf16 %v1249_v31, %v1246_v30 }
 0x504   : > { %v1324_v39 = vsel %vm1319_vm2, %v1318_v35, 0 }
 0x505   : > { %v1309_v41 = vpop.f32.mrb[12].mxu1  ;;  %3314 = vmatpush3.bf16.xpose.msra.mxu0 %v1324_v39 }
 0x506   : > { %v3311_v44 = vpop.f32.mrb[13].mxu1  ;;  %3325 = vmatprep.subr.bf16.mxu0 %v4615_v34  ;;  %v1310_v46 = vadd.f32 %v3143_v40, %v1309_v41 }
 0x507   : > { %v1312_v45 = vpop.f32.mrb[14].mxu1 }
 0x508   : > { %v1313_v47 = vadd.f32 %v3143_v40, %v1312_v45  ;;  %v3312_v48 = vpop.f32.mrb[15].mxu1 }
 0x50a   : > { %v1379_v51 = vpack.c.bf16 %v1313_v47, %v1310_v46 }
 0x50c   : > { %3316 = vmatmul.mubr.msk.bf16.vlgmr.msra.gmra.mrb[0].mxu0 %vm1319_vm2, %v1317_v50  ;;  %3320 = vmatpush3.bf16.msra.mxu1 %v1379_v51 }
 0x50d   : > { %3326 = vmatpush3.bf16.msra.mxu0 %v3797_v49  ;;  %3329 = vmatprep.mubr.msk.bf16.mxu0 %vm4616_vm1, %v4615_v34 }
 0x50e   : > { %3327 = vmatprep.subr.bf16.mxu0 %v4615_v34  ;;  %3333 = vmatprep.subr.bf16.mxu1 %v4615_v34 }
 0x511   : > { %3328 = vmatpush3.bf16.msra.mxu0 %v3798_v52 }
 0x512   : > { %3341 = vmatprep.subr.bf16.mxu0 %v4615_v34 }
 0x514   : > { %3330 = vmatmul.mubr.msk.bf16.vlgmr.msra.gmra.mrb[4].mxu0 %vm990_vm0, %v5403_v14 }
 0x515   : > { %3342 = vmatpush3.bf16.msra.mxu0 %v3799_v53  ;;  %3345 = vmatprep.mubr.msk.bf16.mxu0 %vm4616_vm1, %v4615_v34 }
 0x516   : > { %3343 = vmatprep.subr.bf16.mxu0 %v4615_v34 }
 0x519   : > { %3344 = vmatpush3.bf16.msra.mxu0 %v3800_v54  ;;  %v1729_v54 = vld [vmem:[#allocation22 + $0x4] sm:$0xf] }
 0x51a   : > { %3355 = vmatprep.subr.bf16.mxu0 %v4615_v34 }
 0x51c   : > { %3346 = vmatmul.mubr.msk.bf16.vlgmr.msra.gmra.mrb[8].mxu0 %vm990_vm0, %v5412_v19 }
 0x51d   : > { %3357 = vmatprep.mubr.msk.bf16.mxu0 %vm4616_vm1, %v4615_v34 }
 0x5df   : > { %v1360_v55 = vpop.f32.mrb[0].mxu0 }
 0x5e0   : > { %v3317_v56 = vpop.f32.mrb[1].mxu0  ;;  %v1367_v57 = vsel %vm1366_vm3, %v1360_v55, -inf }
 0x5e1   : > { %1368 = vmax.xlane.f32.xlu1 %v1367_v57  ;;  %v1363_v58 = vpop.f32.mrb[2].mxu0 }
 0x5e2   : > { %v3318_v59 = vpop.f32.mrb[3].mxu0  ;;  %v1424_v58 = vld [vmem:[#allocation22] sm:$0xf] }
 0x5e7   : > { %v1484_v60 = vpop.f32.mrb[4].mxu0 }
 0x5e8   : > { %v3331_v61 = vpop.f32.mrb[5].mxu0  ;;  %v1485_v35 = vadd.f32 %v3149_v29, %v1484_v60 }
 0x5e9   : > { %v1487_v62 = vpop.f32.mrb[6].mxu0  ;;  %v1781_v61 = vsel %vm1733_vm4, %v1424_v58, 0 }
 0x5ea   : > { %v3332_v63 = vpop.f32.mrb[7].mxu0  ;;  %v1622_v41 = vmul.f32 0.35355338, %v1485_v35  ;;  %v3803_v62 = vld [vmem:[#allocation14 + $0x20] sm:$0xff]  }
 0x5ec   : > { %v1623_v42 = vpack.c.bf16 %v1622_v41, %v1622_v41 }
 0x5ef   : > { %v1615_v1 = vpop.f32.mrb[8].mxu0 }
 0x5f0   : > { %v3347_v2 = vpop.f32.mrb[9].mxu0  ;;  %v1616_v4 = vadd.f32 %v3157_v0, %v1615_v1 }
 0x5f1   : > { %v1618_v3 = vpop.f32.mrb[10].mxu0  ;;  %v3805_v2 = vld [vmem:[#allocation13 + $0x20] sm:$0xff]  }
 0x5f2   : > { %v1619_v5 = vadd.f32 %v3157_v0, %v1618_v3  ;;  %v3348_v7 = vpop.f32.mrb[11].mxu0  ;;  %v3804_v0 = vld [vmem:[#allocation14 + $0x28] sm:$0xff]  }
 0x5f4   : > { %v1683_v8 = vpack.c.bf16 %v1619_v5, %v1616_v4 }
 0x5f6   : > { %3356 = vmatpush3.bf16.msra.mxu0 %v1683_v8  ;;  %v3806_v8 = vld [vmem:[#allocation13 + $0x28] sm:$0xff]  }
 0x5f7   : > { %3367 = vmatprep.subr.bf16.mxu0 %v4615_v34 }
 0x66e   : > { %v1369_v9 = vpop.xlane.xlu1 %1368 }
 0x66f   : > { %v1370_v10 = vsub.f32 %v1360_v55, %v1369_v9  ;;  %v1735_v55 = vsel %vm1733_vm4, %v1729_v54, 0 }
 0x671   : > { %v1371_v11 = vmul.f32 1.442695, %v1370_v10  ;;  %v3807_v10 = vld [vmem:[#allocation16 + $0x20] sm:$0xff]  }
 0x673   : > { %3835 = vpow2.f32 %v1371_v11 }
 0x67d   : > { %v3836_v12 = vpop.eup %3835 }
 0x67e   : > { %v1373_v13 = vsel %vm1366_vm3, %v3836_v12, 0.0 }
 0x67f   : > { %1374 = vadd.xlane.f32.xlu1 %v1373_v13 }
 0x70c   : > { %v1375_v15 = vpop.xlane.xlu1 %1374 }
 0x70d   : > { %3837 = vrcp.f32 %v1375_v15  ;;  %v3808_v15 = vld [vmem:[#allocation16 + $0x28] sm:$0xff]  }
 0x717   : > { %v3838_v16 = vpop.eup %3837 }
 0x718   : > { %v1377_v17 = vmul.f32 %v3838_v16, %v3836_v12  ;;  %v3169_v16 = vld [vmem:[#allocation19 + $0x2] ss:$0 sm:$0xff] }
 0x71a   : > { %v1378_v20 = vpack.c.bf16 %v1377_v17, %v1377_v17 }
 0x71c   : > { %3322 = vmatmul.mubr.msk.bf16.vlgmr.msra.gmra.mrb[16].mxu1 %vm1366_vm3, %v1378_v20 }
 0x71d   : > { %3334 = vmatpush3.bf16.msra.mxu1 %v3801_v18  ;;  %3337 = vmatprep.mubr.msk.bf16.mxu1 %vm4616_vm1, %v4615_v34 }
 0x71e   : > { %3335 = vmatprep.subr.bf16.mxu1 %v4615_v34 }
 0x721   : > { %3336 = vmatpush3.bf16.msra.mxu1 %v3802_v21 }
 0x722   : > { %3349 = vmatprep.subr.bf16.mxu1 %v4615_v34 }
 0x724   : > { %3338 = vmatmul.mubr.msk.bf16.vlgmr.msra.gmra.mrb[20].mxu1 %vm990_vm0, %v5412_v19 }
 0x725   : > { %3351 = vmatprep.mubr.msk.bf16.mxu1 %vm4616_vm1, %v4615_v34 }
 0x7ef   : > { %v1417_v22 = vpop.f32.mrb[16].mxu1 }
 0x7f0   : > { %v3323_v23 = vpop.f32.mrb[17].mxu1  ;;  %v1423_v63 = vpack.c.bf16 %v1417_v22, %v1417_v22 }
 0x7f1   : > { %v1420_v24 = vpop.f32.mrb[18].mxu1 }
 0x7f2   : > { %v3324_v25 = vpop.f32.mrb[19].mxu1 }
 0x7f7   : > { %v1549_v27 = vpop.f32.mrb[20].mxu1 }
 0x7f8   : > { %v3339_v28 = vpop.f32.mrb[21].mxu1  ;;  %v1550_v31 = vadd.f32 %v3153_v26, %v1549_v27 }
 0x7f9   : > { %v1552_v30 = vpop.f32.mrb[22].mxu1 }
 0x7fa   : > { %v1553_v32 = vadd.f32 %v3153_v26, %v1552_v30  ;;  %v3340_v33 = vpop.f32.mrb[23].mxu1 }
 0x7fc   : > { %v1624_v39 = vpack.c.bf16 %v1553_v32, %v1550_v31  ;;  %v3165_v31 = vld [vmem:[#allocation17 + $0x2] ss:$0 sm:$0xff] }
 0x7fe   : > { %v1629_v40 = vsel %vm1319_vm2, %v1624_v39, 0 }
 0x7ff   : > { %3350 = vmatpush3.bf16.xpose.msra.mxu1 %v1629_v40 }
 0x800   : > { %3361 = vmatprep.subr.bf16.mxu1 %v4615_v34 }
 0x806   : > { %3352 = vmatmul.mubr.msk.bf16.vlgmr.msra.gmra.mrb[24].mxu1 %vm1319_vm2, %v1623_v42 }
 0x807   : > { %3363 = vmatprep.mubr.msk.bf16.mxu1 %vm4616_vm1, %v4615_v34  ;;  %3362 = vmatpush3.bf16.msra.mxu1 %v1735_v55 }
 0x808   : > { %3373 = vmatprep.subr.bf16.mxu1 %v4615_v34 }
 0x8d9   : > { %v1665_v44 = vpop.f32.mrb[24].mxu1 }
 0x8da   : > { %v3353_v45 = vpop.f32.mrb[25].mxu1  ;;  %v1671_v46 = vsel %vm1366_vm3, %v1665_v44, -inf }
 0x8db   : > { %1672 = vmax.xlane.f32.xlu1 %v1671_v46  ;;  %v1668_v47 = vpop.f32.mrb[26].mxu1 }
 0x8dc   : > { %v3354_v48 = vpop.f32.mrb[27].mxu1 }
 0x968   : > { %v1673_v49 = vpop.xlane.xlu1 %1672 }
 0x969   : > { %v1674_v50 = vsub.f32 %v1665_v44, %v1673_v49  ;;  %v3173_v44 = vld [vmem:[#allocation20 + $0x2] ss:$0 sm:$0xff] }
 0x96b   : > { %v1675_v51 = vmul.f32 1.442695, %v1674_v50 }
 0x96d   : > { %3839 = vpow2.f32 %v1675_v51 }
 0x977   : > { %v3840_v52 = vpop.eup %3839 }
 0x978   : > { %v1677_v53 = vsel %vm1366_vm3, %v3840_v52, 0.0 }
 0x979   : > { %1678 = vadd.xlane.f32.xlu1 %v1677_v53 }
 0xa06   : > { %v1679_v56 = vpop.xlane.xlu1 %1678 }
 0xa07   : > { %3841 = vrcp.f32 %v1679_v56 }
 0xa11   : > { %v3842_v57 = vpop.eup %3841 }
 0xa12   : > { %v1681_v59 = vmul.f32 %v3842_v57, %v3840_v52 }
 0xa14   : > { %v1682_v60 = vpack.c.bf16 %v1681_v59, %v1681_v59 }
 0xa16   : > { %3358 = vmatmul.mubr.msk.bf16.vlgmr.msra.gmra.mrb[12].mxu0 %vm1366_vm3, %v1682_v60 }
 0xa17   : > { %3368 = vmatpush3.bf16.msra.mxu0 %v1781_v61  ;;  %3369 = vmatprep.mubr.msk.bf16.mxu0 %vm4616_vm1, %v4615_v34 }
 0xa18   : > { %3381 = vmatprep.subr.bf16.mxu0 %v4615_v34 }
 0xa1e   : > { %3370 = vmatmul.mubr.msk.bf16.vlgmr.msra.gmra.mrb[16].mxu0 %vm1319_vm2, %v1423_v63 }
 0xa1f   : > { %3382 = vmatpush3.bf16.msra.mxu0 %v3803_v62  ;;  %3385 = vmatprep.mubr.msk.bf16.mxu0 %vm4616_vm1, %v4615_v34  ;;  %v2127_v62 = vld [vmem:[#allocation22 + $0x8] sm:$0xf] }
 0xa20   : > { %3383 = vmatprep.subr.bf16.mxu0 %v4615_v34  ;;  %v2132_v63 = vsel %vm1733_vm4, %v2127_v62, 0 }
 0xa23   : > { %3384 = vmatpush3.bf16.msra.mxu0 %v3804_v0 }
 0xa24   : > { %3397 = vmatprep.subr.bf16.mxu0 %v4615_v34 }
 0xa26   : > { %3386 = vmatmul.mubr.msk.bf16.vlgmr.msra.gmra.mrb[20].mxu0 %vm990_vm0, %v5412_v19 }
 0xa27   : > { %3399 = vmatprep.mubr.msk.bf16.mxu0 %vm4616_vm1, %v4615_v34 }
 0xae9   : > { %v1721_v1 = vpop.f32.mrb[12].mxu0 }
 0xaea   : > { %v1727_v3 = vpack.c.bf16 %v1721_v1, %v1721_v1  ;;  %v3359_v4 = vpop.f32.mrb[13].mxu0 }
 0xaeb   : > { %v1724_v5 = vpop.f32.mrb[14].mxu0 }
 0xaec   : > { %v3360_v7 = vpop.f32.mrb[15].mxu0  ;;  %3364 = vmatmul.mubr.msk.bf16.vlgmr.msra.gmra.mrb[28].mxu1 %vm1319_vm2, %v1727_v3  ;;  %v3809_v3 = vld [vmem:[#allocation13 + $0x30] sm:$0xff]   ;;  %v3810_v5 = vld [vmem:[#allocation13 + $0x38] sm:$0xff]  }
 0xaed   : > { %3374 = vmatpush3.bf16.msra.mxu1 %v3805_v2  ;;  %3377 = vmatprep.mubr.msk.bf16.mxu1 %vm4616_vm1, %v4615_v34  ;;  %v3811_v7 = vld [vmem:[#allocation16 + $0x30] sm:$0xff]  }
 0xaee   : > { %3375 = vmatprep.subr.bf16.mxu1 %v4615_v34 }
 0xaf1   : > { %v1817_v9 = vpop.f32.mrb[16].mxu0  ;;  %3376 = vmatpush3.bf16.msra.mxu1 %v3806_v8  ;;  %v3812_v8 = vld [vmem:[#allocation16 + $0x38] sm:$0xff]  }
 0xaf2   : > { %v3371_v11 = vpop.f32.mrb[17].mxu0  ;;  %3389 = vmatprep.subr.bf16.mxu1 %v4615_v34 }
 0xaf3   : > { %v1820_v12 = vpop.f32.mrb[18].mxu0 }
 0xaf4   : > { %v3372_v13 = vpop.f32.mrb[19].mxu0  ;;  %3378 = vmatmul.mubr.msk.bf16.vlgmr.msra.gmra.mrb[32].mxu1 %vm990_vm0, %v5403_v14 }
 0xaf5   : > { %3390 = vmatpush3.bf16.msra.mxu1 %v3807_v10  ;;  %3393 = vmatprep.mubr.msk.bf16.mxu1 %vm4616_vm1, %v4615_v34  ;;  %v3813_v10 = vld [vmem:[#allocation14 + $0x30] sm:$0xff]  }
 0xaf6   : > { %3391 = vmatprep.subr.bf16.mxu1 %v4615_v34 }
 0xaf9   : > { %v1947_v17 = vpop.f32.mrb[20].mxu0  ;;  %3392 = vmatpush3.bf16.msra.mxu1 %v3808_v15  ;;  %v3814_v15 = vld [vmem:[#allocation14 + $0x38] sm:$0xff]  }
 0xafa   : > { %v3387_v18 = vpop.f32.mrb[21].mxu0  ;;  %3403 = vmatprep.subr.bf16.mxu1 %v4615_v34  ;;  %v1948_v21 = vadd.f32 %v3169_v16, %v1947_v17 }
 0xafb   : > { %v1950_v20 = vpop.f32.mrb[22].mxu0 }
 0xafc   : > { %v1951_v22 = vadd.f32 %v3169_v16, %v1950_v20  ;;  %v3388_v23 = vpop.f32.mrb[23].mxu0  ;;  %3394 = vmatmul.mubr.msk.bf16.vlgmr.msra.gmra.mrb[36].mxu1 %vm990_vm0, %v5412_v19 }
 0xafd   : > { %3405 = vmatprep.mubr.msk.bf16.mxu1 %vm4616_vm1, %v4615_v34 }
 0xafe   : > { %v2022_v24 = vpack.c.bf16 %v1951_v22, %v1948_v21  ;;  %v3188_v21 = vld [vmem:[#allocation20 + $0x3] ss:$0 sm:$0xff] }
 0xb00   : > { %v2027_v25 = vsel %vm1319_vm2, %v2022_v24, 0 }
 0xb01   : > { %3398 = vmatpush3.bf16.xpose.msra.mxu0 %v2027_v25 }
 0xb02   : > { %3409 = vmatprep.subr.bf16.mxu0 %v4615_v34 }
 0xbbf   : > { %v1771_v26 = vpop.f32.mrb[28].mxu1 }
 0xbc0   : > { %v5495_v27 = vadd.f32 %v1817_v9, %v1771_v26  ;;  %v3365_v28 = vpop.f32.mrb[29].mxu1 }
 0xbc1   : > { %v1774_v29 = vpop.f32.mrb[30].mxu1 }
 0xbc2   : > { %v3366_v30 = vpop.f32.mrb[31].mxu1 }
 0xbc7   : > { %v1882_v32 = vpop.f32.mrb[32].mxu1 }
 0xbc8   : > { %v1883_v33 = vadd.f32 %v3165_v31, %v1882_v32  ;;  %v3379_v35 = vpop.f32.mrb[33].mxu1 }
 0xbc9   : > { %v1885_v39 = vpop.f32.mrb[34].mxu1  ;;  %v3184_v35 = vld [vmem:[#allocation19 + $0x3] ss:$0 sm:$0xff] }
 0xbca   : > { %v2020_v40 = vmul.f32 0.35355338, %v1883_v33  ;;  %v3380_v41 = vpop.f32.mrb[35].mxu1 }
 0xbcb   : > { %v3180_v41 = vld [vmem:[#allocation17 + $0x3] ss:$0 sm:$0xff] }
 0xbcc   : > { %v2021_v42 = vpack.c.bf16 %v2020_v40, %v2020_v40 }
 0xbce   : > { %3400 = vmatmul.mubr.msk.bf16.vlgmr.msra.gmra.mrb[24].mxu0 %vm1319_vm2, %v2021_v42 }
 0xbcf   : > { %v2013_v45 = vpop.f32.mrb[36].mxu1  ;;  %3411 = vmatprep.mubr.msk.bf16.mxu0 %vm4616_vm1, %v4615_v34  ;;  %3410 = vmatpush3.bf16.msra.mxu0 %v2132_v63 }
 0xbd0   : > { %v3395_v46 = vpop.f32.mrb[37].mxu1  ;;  %v2014_v48 = vadd.f32 %v3173_v44, %v2013_v45  ;;  %3423 = vmatprep.subr.bf16.mxu0 %v4615_v34 }
 0xbd1   : > { %v2016_v47 = vpop.f32.mrb[38].mxu1 }
 0xbd2   : > { %v2017_v49 = vadd.f32 %v3173_v44, %v2016_v47  ;;  %v3396_v50 = vpop.f32.mrb[39].mxu1 }
 0xbd4   : > { %v2081_v51 = vpack.c.bf16 %v2017_v49, %v2014_v48 }
 0xbd6   : > { %3404 = vmatpush3.bf16.msra.mxu1 %v2081_v51 }
 0xbd7   : > { %3415 = vmatprep.subr.bf16.mxu1 %v4615_v34 }
 0xca1   : > { %v2063_v52 = vpop.f32.mrb[24].mxu0 }
 0xca2   : > { %v3401_v53 = vpop.f32.mrb[25].mxu0  ;;  %v2069_v54 = vsel %vm1366_vm3, %v2063_v52, -inf }
 0xca3   : > { %2070 = vmax.xlane.f32.xlu1 %v2069_v54  ;;  %v2066_v55 = vpop.f32.mrb[26].mxu0 }
 0xca4   : > { %v3402_v56 = vpop.f32.mrb[27].mxu0 }
 0xd30   : > { %v2071_v57 = vpop.xlane.xlu1 %2070 }
 0xd31   : > { %v2072_v58 = vsub.f32 %v2063_v52, %v2071_v57 }
 0xd33   : > { %v2073_v59 = vmul.f32 1.442695, %v2072_v58 }
 0xd35   : > { %3843 = vpow2.f32 %v2073_v59 }
 0xd3f   : > { %v3844_v60 = vpop.eup %3843 }
 0xd40   : > { %v2075_v61 = vsel %vm1366_vm3, %v3844_v60, 0.0 }
 0xd41   : > { %2076 = vadd.xlane.f32.xlu1 %v2075_v61  ;;  %v2479_v61 = vld [vmem:[#allocation22 + $0xc] sm:$0xf] }
 0xd42   : > { %v2484_v62 = vsel %vm1733_vm4, %v2479_v61, 0 }
 0xdce   : > { %v2077_v0 = vpop.xlane.xlu1 %2076 }
 0xdcf   : > { %3845 = vrcp.f32 %v2077_v0 }
 0xdd9   : > { %v3846_v1 = vpop.eup %3845 }
 0xdda   : > { %v2079_v2 = vmul.f32 %v3846_v1, %v3844_v60 }
 0xddc   : > { %v2080_v4 = vpack.c.bf16 %v2079_v2, %v2079_v2 }
 0xdde   : > { %3406 = vmatmul.mubr.msk.bf16.vlgmr.msra.gmra.mrb[40].mxu1 %vm1366_vm3, %v2080_v4 }
 0xddf   : > { %3416 = vmatpush3.bf16.msra.mxu1 %v3809_v3  ;;  %3419 = vmatprep.mubr.msk.bf16.mxu1 %vm4616_vm1, %v4615_v34 }
 0xde0   : > { %3417 = vmatprep.subr.bf16.mxu1 %v4615_v34 }
 0xde3   : > { %3418 = vmatpush3.bf16.msra.mxu1 %v3810_v5 }
 0xde4   : > { %3431 = vmatprep.subr.bf16.mxu1 %v4615_v34 }
 0xde6   : > { %3420 = vmatmul.mubr.msk.bf16.vlgmr.msra.gmra.mrb[44].mxu1 %vm990_vm0, %v5403_v14 }
 0xde7   : > { %3432 = vmatpush3.bf16.msra.mxu1 %v3811_v7  ;;  %3435 = vmatprep.mubr.msk.bf16.mxu1 %vm4616_vm1, %v4615_v34 }
 0xde8   : > { %3433 = vmatprep.subr.bf16.mxu1 %v4615_v34 }
 0xdeb   : > { %3434 = vmatpush3.bf16.msra.mxu1 %v3812_v8 }
 0xdec   : > { %3445 = vmatprep.subr.bf16.mxu1 %v4615_v34 }
 0xdee   : > { %3436 = vmatmul.mubr.msk.bf16.vlgmr.msra.gmra.mrb[48].mxu1 %vm990_vm0, %v5412_v19 }
 0xdef   : > { %3447 = vmatprep.mubr.msk.bf16.mxu1 %vm4616_vm1, %v4615_v34 }
 0xeb1   : > { %v2119_v9 = vpop.f32.mrb[40].mxu1 }
 0xeb2   : > { %v2125_v11 = vpack.c.bf16 %v2119_v9, %v2119_v9  ;;  %v3407_v14 = vpop.f32.mrb[41].mxu1 }
 0xeb3   : > { %v2122_v12 = vpop.f32.mrb[42].mxu1 }
 0xeb4   : > { %v3408_v13 = vpop.f32.mrb[43].mxu1  ;;  %3412 = vmatmul.mubr.msk.bf16.vlgmr.msra.gmra.mrb[28].mxu0 %vm1319_vm2, %v2125_v11 }
 0xeb5   : > { %3424 = vmatpush3.bf16.msra.mxu0 %v3813_v10  ;;  %3427 = vmatprep.mubr.msk.bf16.mxu0 %vm4616_vm1, %v4615_v34  ;;  %v3195_v10 = vld [vmem:[#allocation23] ss:$0 sm:$0xff] }
 0xeb6   : > { %3425 = vmatprep.subr.bf16.mxu0 %v4615_v34 }
 0xeb9   : > { %v2234_v16 = vpop.f32.mrb[44].mxu1  ;;  %3426 = vmatpush3.bf16.msra.mxu0 %v3814_v15 }
 0xeba   : > { %v3421_v17 = vpop.f32.mrb[45].mxu1  ;;  %3439 = vmatprep.subr.bf16.mxu0 %v4615_v34  ;;  %v2235_v47 = vadd.f32 %v3180_v41, %v2234_v16  ;;  %v3196_v41 = vld [vmem:[#allocation25] ss:$0 sm:$0xff] }
 0xebb   : > { %v2237_v18 = vpop.f32.mrb[46].mxu1 }
 0xebc   : > { %v3422_v20 = vpop.f32.mrb[47].mxu1  ;;  %3428 = vmatmul.mubr.msk.bf16.vlgmr.msra.gmra.mrb[32].mxu0 %vm990_vm0, %v5412_v19  ;;  %v2372_v50 = vmul.f32 0.35355338, %v2235_v47 }
 0xebd   : > { %3441 = vmatprep.mubr.msk.bf16.mxu0 %vm4616_vm1, %v4615_v34  ;;  %v3855_v20 = vld [vmem:[%s5364_s25] sm:$0xff]  ;;  %s4620_s25 = smov [#allocation34]  }
 0xec1   : > { %v2365_v22 = vpop.f32.mrb[48].mxu1 }
 0xec2   : > { %v3437_v23 = vpop.f32.mrb[49].mxu1  ;;  %v2366_v25 = vadd.f32 %v3188_v21, %v2365_v22 }
 0xec3   : > { %v2368_v24 = vpop.f32.mrb[50].mxu1 }
 0xec4   : > { %v2369_v26 = vadd.f32 %v3188_v21, %v2368_v24  ;;  %v3438_v28 = vpop.f32.mrb[51].mxu1 }
 0xec6   : > { %v2433_v29 = vpack.c.bf16 %v2369_v26, %v2366_v25 }
 0xec8   : > { %3446 = vmatpush3.bf16.msra.mxu1 %v2433_v29  ;;  %v3815_v29 = vld [vmem:[#allocation28] sm:$0xff]  }
 0xec9   : > { %3457 = vmatprep.subr.bf16.mxu1 %v4615_v34 }
 0xf87   : > { %v2168_v30 = vpop.f32.mrb[28].mxu0 }
 0xf88   : > { %v2174_v31 = vadd.f32 %v2168_v30, %v5495_v27  ;;  %v3413_v32 = vpop.f32.mrb[29].mxu0  ;;  %v2373_v27 = vpack.c.bf16 %v2372_v50, %v2372_v50  ;;  %v3816_v30 = vld [vmem:[#allocation28 + $0x8] sm:$0xff]  }
 0xf89   : > { %v2171_v33 = vpop.f32.mrb[30].mxu0 }
 0xf8a   : > { %v3414_v19 = vpop.f32.mrb[31].mxu0 }
 0xf8b   : > { %v986_v19 = vsub.s32 1, %v5381_v36 }
 0xf8f   : > { %v2299_v39 = vpop.f32.mrb[32].mxu0 }
 0xf90   : > { %v3429_v40 = vpop.f32.mrb[33].mxu0  ;;  %v2300_v44 = vadd.f32 %v3184_v35, %v2299_v39 }
 0xf91   : > { %v2302_v42 = vpop.f32.mrb[34].mxu0 }
 0xf92   : > { %v2303_v45 = vadd.f32 %v3184_v35, %v2302_v42  ;;  %v3430_v46 = vpop.f32.mrb[35].mxu0  ;;  %v987_v35 = vrot.slane %v5386_v38, %v986_v19  ;;  %v3817_v38 = vld [vmem:[#allocation31] sm:$0xff]  }
 0xf94   : > { %v2374_v48 = vpack.c.bf16 %v2303_v45, %v2300_v44  ;;  %v5560_v39 = vadd.f32 %v5395_v43, %v987_v35  ;;  %v3197_v44 = vld [vmem:[#allocation26] ss:$0 sm:$0xff] }
 0xf95   : > { %v3818_v43 = vld [vmem:[#allocation31 + $0x8] sm:$0xff]  }
 0xf96   : > { %v2379_v49 = vsel %vm1319_vm2, %v2374_v48, 0 }
 0xf97   : > { %3440 = vmatpush3.bf16.xpose.msra.mxu0 %v2379_v49 }
 0xf98   : > { %3451 = vmatprep.subr.bf16.mxu0 %v4615_v34 }
 0xf9e   : > { %3442 = vmatmul.mubr.msk.bf16.vlgmr.msra.gmra.mrb[36].mxu0 %vm1319_vm2, %v2373_v27  ;;  %v3819_v27 = vld [vmem:[#allocation31 + $0x10] sm:$0xff]  }
 0xf9f   : > { %3453 = vmatprep.mubr.msk.bf16.mxu0 %vm4616_vm1, %v4615_v34  ;;  %3452 = vmatpush3.bf16.msra.mxu0 %v2484_v62 }
 0xfa0   : > { %3465 = vmatprep.subr.bf16.mxu0 %v4615_v34 }
0x1071   : > { %v2415_v51 = vpop.f32.mrb[36].mxu0 }
0x1072   : > { %v3443_v52 = vpop.f32.mrb[37].mxu0  ;;  %v2421_v53 = vsel %vm1366_vm3, %v2415_v51, -inf }
0x1073   : > { %2422 = vmax.xlane.f32.xlu0 %v2421_v53  ;;  %v2418_v54 = vpop.f32.mrb[38].mxu0  ;;  %v3821_v52 = vld [vmem:[#allocation31 + $0x20] sm:$0xff]   ;;  %v3822_v53 = vld [vmem:[#allocation31 + $0x28] sm:$0xff]  }
0x1074   : > { %v3444_v55 = vpop.f32.mrb[39].mxu0  ;;  %v3823_v54 = vld [vmem:[#allocation31 + $0x30] sm:$0xff]  }
0x1075   : > { %v3824_v55 = vld [vmem:[#allocation31 + $0x38] sm:$0xff]  }
0x1100   : > { %v2423_v56 = vpop.xlane.xlu0 %2422 }
0x1101   : > { %v2424_v57 = vsub.f32 %v2415_v51, %v2423_v56  ;;  %v3820_v51 = vld [vmem:[#allocation31 + $0x18] sm:$0xff]  }
0x1102   : > { %v3198_v56 = vld [vmem:[#allocation29] ss:$0 sm:$0xff] }
0x1103   : > { %v2425_v58 = vmul.f32 1.442695, %v2424_v57 }
0x1105   : > { %3847 = vpow2.f32 %v2425_v58 }
0x110f   : > { %v3848_v59 = vpop.eup %3847 }
0x1110   : > { %v2427_v60 = vsel %vm1366_vm3, %v3848_v59, 0.0 }
0x1111   : > { %2428 = vadd.xlane.f32.xlu1 %v2427_v60 }
0x119e   : > { %v2429_v63 = vpop.xlane.xlu1 %2428 }
0x119f   : > { %3849 = vrcp.f32 %v2429_v63 }
0x11a9   : > { %v3850_v0 = vpop.eup %3849 }
0x11aa   : > { %v2431_v1 = vmul.f32 %v3850_v0, %v3848_v59 }
0x11ac   : > { %v2432_v2 = vpack.c.bf16 %v2431_v1, %v2431_v1 }
0x11ae   : > { %3448 = vmatmul.mubr.msk.bf16.vlgmr.msra.gmra.mrb[52].mxu1 %vm1366_vm3, %v2432_v2 }
0x11af   : > { %3461 = vmatprep.mubr.msk.bf16.mxu1 %vm4616_vm1, %v4615_v34  ;;  %3458 = vmatpush3.bf16.msra.mxu1 %v3815_v29 }
0x11b0   : > { %3459 = vmatprep.subr.bf16.mxu1 %v4615_v34 }
0x11b3   : > { %3460 = vmatpush3.bf16.msra.mxu1 %v3816_v30 }
0x1281   : > { %v2471_v3 = vpop.f32.mrb[52].mxu1 }
0x1282   : > { %v2477_v4 = vpack.c.bf16 %v2471_v3, %v2471_v3  ;;  %v3449_v5 = vpop.f32.mrb[53].mxu1 }
0x1283   : > { %v2474_v7 = vpop.f32.mrb[54].mxu1 }
0x1284   : > { %v3450_v8 = vpop.f32.mrb[55].mxu1  ;;  %3454 = vmatmul.mubr.msk.bf16.vlgmr.msra.gmra.mrb[40].mxu0 %vm1319_vm2, %v2477_v4 }
0x1285   : > { %3481 = vmatprep.mubr.msk.bf16.mxu0 %vm4616_vm1, %v4615_v34  ;;  %3466 = vmatpush3.bf16.msra.mxu0 %v3817_v38  ;;  %v3202_v8 = vld [vmem:[#allocation32] ss:$0 sm:$0xff] }
0x1286   : > { %3467 = vmatprep.subr.bf16.mxu0 %v4615_v34 }
0x1289   : > { %3468 = vmatpush3.bf16.msra.mxu0 %v3818_v43 }
0x128a   : > { %3469 = vmatprep.subr.bf16.mxu0 %v4615_v34 }
0x128d   : > { %3470 = vmatpush3.bf16.msra.mxu0 %v3819_v27 }
0x128e   : > { %3471 = vmatprep.subr.bf16.mxu0 %v4615_v34 }
0x1291   : > { %3472 = vmatpush3.bf16.msra.mxu0 %v3820_v51 }
0x1292   : > { %3473 = vmatprep.subr.bf16.mxu0 %v4615_v34 }
0x1295   : > { %3474 = vmatpush3.bf16.msra.mxu0 %v3821_v52 }
0x1296   : > { %3475 = vmatprep.subr.bf16.mxu0 %v4615_v34 }
0x1299   : > { %3476 = vmatpush3.bf16.msra.mxu0 %v3822_v53 }
0x129a   : > { %3477 = vmatprep.subr.bf16.mxu0 %v4615_v34 }
0x129d   : > { %3478 = vmatpush3.bf16.msra.mxu0 %v3823_v54 }
0x129e   : > { %3479 = vmatprep.subr.bf16.mxu0 %v4615_v34 }
0x12a1   : > { %3480 = vmatpush3.bf16.msra.mxu0 %v3824_v55 }
0x1357   : > { %v2520_v9 = vpop.f32.mrb[40].mxu0 }
0x1358   : > { %v2526_v11 = vadd.f32 %v2520_v9, %v2174_v31  ;;  %v3455_v14 = vpop.f32.mrb[41].mxu0 }
0x1359   : > { %v2523_v12 = vpop.f32.mrb[42].mxu0 }
0x135a   : > { %v2534_v13 = vadd.f32 %v3195_v10, %v2526_v11  ;;  %v3456_v15 = vpop.f32.mrb[43].mxu0 }
0x135c   : > { %2536 = vrot.lane.b32.xlu1 %v2534_v13, %s4618_s9  ;;  %v2775_v13 = vrot.slane %v5560_v39, %v5384_v37 }
0x13ce   : > { %v2537_v16 = vpop.permute.xlu1 %2536 }
0x13cf   : > { %v2539_v17 = vmul.f32 %v2537_v16, %v5400_v6 }
0x13d1   : > { %2541 = vrot.lane.b32.xlu1 %v2539_v17, %s4618_s9 }
0x1443   : > { %v2542_v18 = vpop.permute.xlu1 %2541 }
0x1444   : > { %v5548_v21 = vadd.f32 %v3855_v20, %v2542_v18 }
0x1446   : > { %v2547_v22 = vsel %vm990_vm0, %v5548_v21, 0.0 }
0x1447   : > { %2548 = vadd.xlane.f32.xlu1 %v2547_v22 }
0x14d4   : > { %v2549_v23 = vpop.xlane.xlu1 %2548 }
0x14d5   : > { %v2550_v24 = vmul.f32 0.03125, %v2549_v23 }
0x14d7   : > { %v2551_v25 = vsub.f32 %v5548_v21, %v2550_v24 }
0x14d9   : > { %v2552_v26 = vmul.f32 %v2551_v25, %v2551_v25 }
0x14db   : > { %v2553_v28 = vsel %vm990_vm0, %v2552_v26, 0.0 }
0x14dc   : > { %2554 = vadd.xlane.f32.xlu0 %v2553_v28 }
0x14f2   : > { %2580 = vrot.lane.b32.xlu0 %v5400_v6, %s4619_s8  ;;  %v1036_v6 = vadd.f32 1.0, %v5560_v39 }
0x14f4   : > { %v2577_v47 = vrot.slane %v1036_v6, %v5384_v37 }
0x1569   : > { %v2555_v31 = vpop.xlane.xlu0 %2554 }
0x156a   : > { %v2556_v32 = vmul.f32 0.03125, %v2555_v31 }
0x156c   : > { %v2557_v33 = vadd.f32 1e-05, %v2556_v32 }
0x156d   : > { %v2581_v49 = vpop.permute.xlu0 %2580 }
0x156e   : > { %3851 = vrsqrt.f32 %v2557_v33 }
0x1578   : > { %v3852_v40 = vpop.eup %3851 }
0x1579   : > { %v2559_v42 = vmul.f32 %v3852_v40, %v2551_v25 }
0x157b   : > { %v2566_v45 = vmul.f32 %v3196_v41, %v2559_v42 }
0x157d   : > { %v2573_v46 = vadd.f32 %v3197_v44, %v2566_v45 }
0x157f   : > { %v2578_v48 = vmul.f32 %v2577_v47, %v2573_v46 }
0x1581   : > { %v2583_v50 = vadd.f32 %v2581_v49, %v2578_v48 }
0x1583   : > { %v2584_v36 = vpack.c.bf16 %v2583_v50, %v2583_v50 }
0x1585   : > { %3462 = vmatmul.mubr.msk.bf16.vlgmr.msra.gmra.mrb[56].mxu1 %vm990_vm0, %v2584_v36 }
0x1658   : > { %v2645_v57 = vpop.f32.mrb[56].mxu1 }
0x1659   : > { %v2646_v58 = vadd.f32 %v3198_v56, %v2645_v57  ;;  %v3463_v59 = vpop.f32.mrb[57].mxu1 }
0x165a   : > { %v2648_v60 = vpop.f32.mrb[58].mxu1 }
0x165b   : > { %v2651_v61 = vmul.f32 %v2646_v58, %v2646_v58  ;;  %v3464_v62 = vpop.f32.mrb[59].mxu1 }
0x165d   : > { %v2652_v63 = vmul.f32 %v2651_v61, %v2646_v58 }
0x165f   : > { %v2653_v0 = vmul.f32 0.044715, %v2652_v63 }
0x1661   : > { %v2654_v1 = vadd.f32 %v2653_v0, %v2646_v58 }
0x1663   : > { %v2655_v2 = vmul.f32 0.7978846, %v2654_v1 }
0x1665   : > { %3853 = vtanh.f32 %v2655_v2 }
0x166f   : > { %v3854_v3 = vpop.eup %3853 }
0x1670   : > { %v2657_v4 = vadd.f32 1.0, %v3854_v3 }
0x1672   : > { %v2658_v5 = vmul.f32 0.5, %v2657_v4 }
0x1674   : > { %v2659_v7 = vmul.f32 %v2658_v5, %v2646_v58 }
0x1676   : > { %v2660_v34 = vpack.c.bf16 %v2659_v7, %v2659_v7 }
0x1678   : > { %3482 = vmatmul.mubr.bf16.vlgmr.msra.gmra.mrb[44].mxu0 %v2660_v34 }
0x174b   : > { %v2766_v9 = vpop.f32.mrb[44].mxu0 }
0x174c   : > { %v2767_v10 = vadd.f32 %v3202_v8, %v2766_v9  ;;  %v3483_v11 = vpop.f32.mrb[45].mxu0 }
0x174d   : > { %v2769_v14 = vpop.f32.mrb[46].mxu0 }
0x174e   : > { %2777 = vrot.lane.b32.xlu0 %v2767_v10, %s4619_s8  ;;  %v3484_v12 = vpop.f32.mrb[47].mxu0 }
0x17c0   : > { %v2778_v15 = vpop.permute.xlu0 %2777 }
0x17c1   : > { %v2780_v16 = vmul.f32 %v2778_v15, %v2775_v13 }
0x17c3   : > { %2782 = vrot.lane.b32.xlu0 %v2780_v16, %s4617_s28  ;;  %s4424_s28 = sshll.u32 %s4620_s25, 4  ;;  %s4425_s28 = int_to_ptr.vmem [resolvable:$false] %s4424_s28 }
0x17c4   : > { %s4426_s9 = scalar_lea.vmem %s4425_s28, 256  ;;  %p4427_p7 = scmp.lt.s32.totalorder %s5585_s22, %s4425_s28 }
0x17c5   : > { %p4428_p10 = scmp.lt.s32.totalorder %s4426_s9, %s4420_s21 }
0x17c7   : > { %p4429_p4 = por %p4428_p10, %p4427_p7 }
0x17c9   : > { %p4430_p0 = pnand %p4429_p4, %p4423_p3 }
0x1835   : > { %v2783_v17 = vpop.permute.xlu0 %2782 }
0x1836   : > { %v2785_v18 = vadd.f32 %v2783_v17, %v5548_v21 }
0x1838   : > { %2786 = vst.msk [vmem:[%s940_s23] sm:$0xff] %vm990_vm0, %v2785_v18 }
0x1839   : > { %4433 = shalt.err (!%p4430_p0)
}
0x183a   : > { %s4434_s8 = scalar_lea.hbm %s5583_s26, 128  ;;  %s4438_s5 = scalar_lea.hbm %s5816_s13, 512 }
0x183b   : > { %p4435_p11 = scmp.ne.s32.totalorder %s5583_s26, %s4434_s8  ;;  %p4439_p5 = scmp.lt.u32.totalorder %s5583_s26, %s5816_s13 }
0x183c   : > { %p4440_p2 = scmp.lt.u32.totalorder %s4438_s5, %s4434_s8  ;;  %p4442_p6 = scmp.lt.u32.totalorder %s4434_s8, %s5583_s26 }
0x183d   : > { %p4436_p13 = pnand %p4435_p11, %p5817_p8 }
0x183e   : > { %p4441_p12 = por %p4440_p2, %p4439_p5 }
0x183f   : > { %p4437_p1 = pneg %p4436_p13 }
0x1840   : > { %p4443_p9 = por %p4442_p6, %p4441_p12 }
0x1842   : > { %p4444_p3 = pnand %p4443_p9, %p4437_p1 }
0x1844   : > { %4447 = shalt.err (!%p4444_p3)
}
0x1845   : > { %3561 = dma.vmem_to_hbm [thread:$0]  (%p5817_p8), %s5585_s22, 128, %s5583_s26, %s2788_s0  }
0x1846 PF: > { %s5818_s6 = sld [smem:[#allocation58_spill]]  ;;  %s5819_s16 = sld [smem:[#allocation48_spill]] }
0x1847   : > { %p5820_p10 = scmp.ne.s32.totalorder %s5781_s4, 0 }
0x184c   : > { %p3666_p7 = scmp.ge.s32.totalorder %s5818_s6, 2  ;;  %s2815_s23 = sand.u32 1, %s5819_s16  }
0x184d   : > { %s2816_s3 = scalar_lea.sflag [#allocation4], %s2815_s23 }
0x184e   : > { %p3626_p4 = pnand %p3666_p7, %p5820_p10 }
0x1850   : > { %4541 = dma.done.wait (!%p3626_p4), %s2816_s3, 128  }
0x1851   : > { %4543 = vsyncadd (!%p3626_p4), %s2816_s3, 4294967168  ;;  %s48_s4 = sadd.s32 1, %s5818_s6   ;;  %s5821_s1 = sld [smem:[#allocation49_spill]] }
0x1852   : > { %p45_p0 = scmp.ge.s32.totalorder %s48_s4, 6   ;;  %s5822_s22 = sld [smem:[#allocation50_spill]] }
0x1853   : > { %s5823_s29 = sld [smem:[#allocation52_spill]]  ;;  %s5824_s11 = sld [smem:[#allocation53_spill]] }
0x1854   : > { %s5825_s3 = sld [smem:[#allocation56_spill]]  ;;  %s5826_s26 = sld [smem:[#allocation57_spill]] }
0x1855   : > { %s5827_s0 = smov %s5839_s24  ;;  %s5828_s23 = smov %s5841_s2 }
0x1856   : > { %s5831_s25 = smov %s5213_s7  ;;  %5832 = sst [smem:[#allocation48_spill]] %s5835_s20 }
0x1857   : > { %s5833_s28 = smov %s5827_s0  ;;  %47 = sbr.rel (!%p45_p0) target bundleno = 40 (0x28), region = 252 }
0x1859   : > { %s5829_s24 = smov %s5823_s29  ;;  %s5830_s2 = smov %s5824_s11 }
0x185e   :  { %2821 = vsyncpa [#allocation3], 1 }
0x185f   :  { %2823 = vsyncpa [#allocation3 + $0x1], 1 }
0x1860   :  { %2824 = vsyncpa [#allocation6], 1 }
0x1861   :  { %2826 = vsyncpa [#allocation6 + $0x1], 1 }
0x1862   :  { %2827 = vsyncpa [#allocation9], 1 }
0x1863   :  { %2828 = vsyncpa [#allocation12], 1 }
0x1864   :  { %2829 = vsyncpa [#allocation15], 1 }
0x1865   :  { %2830 = vsyncpa [#allocation18], 1 }
0x1866   :  { %2831 = vsyncpa [#allocation21], 1 }
0x1867   :  { %2832 = vsyncpa [#allocation24], 1 }
0x1868   :  { %2833 = vsyncpa [#allocation27], 1 }
0x1869   :  { %2834 = vsyncpa [#allocation30], 1 }
0x186a   :  { %2835 = vsyncpa [#allocation33], 1 }
0x186b   :  { %2836 = vsyncpa [#allocation4], 1 }
0x186c   :  { %2838 = vsyncpa [#allocation4 + $0x1], 1 }

</bundles_post_ra>
